<compile_context>
chip_gen: v7x
topology: tpu7x:2x2x1
jax: 0.10.0
libtpu: 0.0.40
codegen_flags: <defaults>
</compile_context>

<pallas_src>
import functools
import math

import jax
import jax.numpy as jnp
import numpy as np
from jax.experimental import pallas as pl
from jax.experimental.pallas import tpu as pltpu  # noqa: F401  (TPU backend)

# ----- small synthetic BERTweet-style dims -----
B = 2             # batch
S = 8             # sequence length
H = 32            # hidden size
NH = 4            # attention heads
HD = H // NH      # head dim
FF = 64           # FFN intermediate size
NL = 2            # encoder layers
V = 64            # vocab size
NUM_LABELS = 3
LANE = 128        # lane width -> lane-dense classifier output
LN_EPS = 1e-5


def _layernorm(x, g, b, eps=LN_EPS):
    # f32 statistics (keep off bf16 even when matmuls are bf16).
    mu = jnp.mean(x, axis=-1, keepdims=True)
    var = jnp.mean(jnp.square(x - mu), axis=-1, keepdims=True)
    return (x - mu) * jax.lax.rsqrt(var + eps) * g + b


# ---------------------------------------------------------------------------
# Shared forward math: used by the Pallas kernel body (on loaded VMEM tiles)
# and by the pure-JAX reference (on the same packed parameter slabs).
# ---------------------------------------------------------------------------
def _forward_math(x, neg, embln, wqkv, bqkv, wo, bo, ln, w1, b1, w2, b2,
                  pw, pb, cw, cb, *, recip):
    # --- embedding LayerNorm (x kept as (B*S, H) f32 for all layers) ---
    x = _layernorm(x, embln[0:1, :], embln[1:2, :])

    scale = 1.0 / math.sqrt(HD)
    for l in range(NL):                                     # static unroll over layers
        xb = x.astype(jnp.bfloat16)

        # fused QKV projection: one (B*S, H) x (H, 3H) bf16 MXU matmul
        qkv = jnp.dot(xb, wqkv[l],
                      preferred_element_type=jnp.float32) + bqkv[l]     # (B*S, 3H) f32

        # multi-head attention, batched over B; per-head output projections
        # are accumulated (no concatenate / relayout of ctx).
        # TODO(synk): a single 4-D multi-batch dot_general over (B, NH) is not
        # reliably lowerable by Mosaic; heads stay a static unroll.
        attn = None
        for h in range(NH):
            lo = h * HD
            qh = qkv[:, lo:lo + HD].reshape(B, S, HD).astype(jnp.bfloat16)
            kh = qkv[:, H + lo:H + lo + HD].reshape(B, S, HD).astype(jnp.bfloat16)
            vh = qkv[:, 2 * H + lo:2 * H + lo + HD].reshape(B, S, HD).astype(jnp.bfloat16)

            s = jnp.einsum('bqd,bkd->bqk', qh, kh,
                           preferred_element_type=jnp.float32) * scale + neg   # (B, S, S)
            s = s - jnp.max(s, axis=-1, keepdims=True)
            p = jnp.exp(s)
            p = p * recip(jnp.sum(p, axis=-1, keepdims=True))

            ctx = jnp.einsum('bqk,bkd->bqd', p.astype(jnp.bfloat16), vh,
                             preferred_element_type=jnp.float32)               # (B, S, HD)
            part = jnp.dot(ctx.reshape(B * S, HD).astype(jnp.bfloat16),
                           wo[l, h],                                           # (HD, H)
                           preferred_element_type=jnp.float32)                 # (B*S, H)
            attn = part if attn is None else attn + part
        attn = attn + bo[l]

        lnp = ln[l]                                          # (4, H): g1, b1, g2, b2
        x1 = _layernorm(x + attn, lnp[0:1, :], lnp[1:2, :])

        # TODO(synk): HF RoBERTa uses exact (erf) GELU; tanh approximation kept
        # for Mosaic-safe lowering (identical in kernel and reference).
        hmid = jax.nn.gelu(
            jnp.dot(x1.astype(jnp.bfloat16), w1[l],
                    preferred_element_type=jnp.float32) + b1[l],
            approximate=True)
        ffn = jnp.dot(hmid.astype(jnp.bfloat16), w2[l],
                      preferred_element_type=jnp.float32) + b2[l]
        x = _layernorm(x1 + ffn, lnp[2:3, :], lnp[3:4, :])

    # --- pooler (tanh on [CLS] token) + classifier, lane-dense (B, 128) slab ---
    cls_tok = x.reshape(B, S, H)[:, 0, :]                    # (B, H)
    pooled = jnp.tanh(
        jnp.dot(cls_tok.astype(jnp.bfloat16), pw,
                preferred_element_type=jnp.float32) + pb)
    return jnp.dot(pooled.astype(jnp.bfloat16), cw,
                   preferred_element_type=jnp.float32) + cb  # (B, LANE) f32


# ---------------------------------------------------------------------------
# Single fused kernel: embedding LN -> NL encoder layers -> pooler -> classifier
# All inputs are full-array VMEM blocks (no grid).
# ---------------------------------------------------------------------------
def bertweet_fwd_kernel(x_ref, neg_ref, embln_ref,
                        wqkv_ref, bqkv_ref, wo_ref, bo_ref, ln_ref,
                        w1_ref, b1_ref, w2_ref, b2_ref,
                        pw_ref, pb_ref, cw_ref, cb_ref,
                        o_ref):
    o_ref[...] = _forward_math(
        x_ref[...], neg_ref[...], embln_ref[...],
        wqkv_ref[...], bqkv_ref[...], wo_ref[...], bo_ref[...], ln_ref[...],
        w1_ref[...], b1_ref[...], w2_ref[...], b2_ref[...],
        pw_ref[...], pb_ref[...], cw_ref[...], cb_ref[...],
        recip=lambda v: pl.reciprocal(v, approx=True))


def _fused_forward(x_flat, neg, p):
    return pl.pallas_call(
        bertweet_fwd_kernel,
        out_shape=jax.ShapeDtypeStruct((B, LANE), jnp.float32),
    )(x_flat, neg, p["emb_ln"],
      p["wqkv"], p["bqkv"], p["wo"], p["bo"], p["ln"],
      p["w1"], p["b1"], p["w2"], p["b2"],
      p["pooler_w"], p["pooler_b"], p["cls_w"], p["cls_b"])


# ---------------------------------------------------------------------------
# Deterministic synthetic parameters (packed / stacked layouts)
# ---------------------------------------------------------------------------
def init_params(key):
    keys = iter(jax.random.split(key, 32))

    def nrm(shape, scale=0.02):
        return (scale * jax.random.normal(next(keys), shape)).astype(jnp.float32)

    ln_unit = jnp.concatenate(
        [jnp.ones((1, 1, H)), jnp.zeros((1, 1, H)),
         jnp.ones((1, 1, H)), jnp.zeros((1, 1, H))], axis=1)        # (1, 4, H)

    cls_w = jnp.zeros((H, LANE), jnp.float32).at[:, :NUM_LABELS].set(
        nrm((H, NUM_LABELS)))

    return {
        # embeddings (f32; gather stays in plain JAX)
        "word_emb": nrm((V, H)),
        "pos_emb": nrm((S, H)),
        "type_emb": nrm((1, H)),
        "emb_ln": jnp.concatenate([jnp.ones((1, H)), jnp.zeros((1, H))],
                                  axis=0).astype(jnp.float32),       # (2, H)
        # encoder weights stacked over layers, matmul weights in bf16
        "wqkv": nrm((NL, H, 3 * H)).astype(jnp.bfloat16),            # [Wq|Wk|Wv]
        "bqkv": jnp.zeros((NL, 1, 3 * H), jnp.float32),
        "wo":   nrm((NL, H, H)).reshape(NL, NH, HD, H).astype(jnp.bfloat16),
        "bo":   jnp.zeros((NL, 1, H), jnp.float32),
        "ln":   jnp.tile(ln_unit, (NL, 1, 1)).astype(jnp.float32),   # (NL, 4, H)
        "w1":   nrm((NL, H, FF)).astype(jnp.bfloat16),
        "b1":   jnp.zeros((NL, 1, FF), jnp.float32),
        "w2":   nrm((NL, FF, H)).astype(jnp.bfloat16),
        "b2":   jnp.zeros((NL, 1, H), jnp.float32),
        # head
        "pooler_w": nrm((H, H)).astype(jnp.bfloat16),
        "pooler_b": jnp.zeros((1, H), jnp.float32),
        "cls_w": cls_w.astype(jnp.bfloat16),                         # (H, 128) lane-dense
        "cls_b": jnp.zeros((1, LANE), jnp.float32),
    }


# ---------------------------------------------------------------------------
# Embedding glue (gather stays in plain JAX) + full forward
# ---------------------------------------------------------------------------
def _embed(params, input_ids):
    # TODO(synk): RoBERTa uses padding-aware position ids (offset by padding_idx+1);
    # simple arange(S) positions used here.
    we = params["word_emb"][input_ids]                       # (B, S, H)
    pe = params["pos_emb"][jnp.arange(S)][None, :, :]        # (1, S, H)
    te = params["type_emb"][0][None, None, :]                # (1, 1, H)
    return (we + pe + te).reshape(B * S, H)


def _mask_to_neg(attention_mask):
    # additive key mask, computed ONCE for all layers / heads
    return (1.0 - attention_mask.astype(jnp.float32))[:, None, :] * -1e9   # (B, 1, S)


@functools.partial(jax.jit, static_argnames=("return_logits",))
def bertweet_classifier_forward(params, input_ids, attention_mask, return_logits=True):
    x_flat = _embed(params, input_ids)
    neg = _mask_to_neg(attention_mask)

    logits_pad = _fused_forward(x_flat, neg, params)          # (B, 128)
    logits = logits_pad[:, :NUM_LABELS]                       # (B, NUM_LABELS)

    if return_logits:
        return logits
    return jnp.argmax(logits, axis=1) + 1                     # predictions path


@jax.jit
def bertweet_reference(params, input_ids, attention_mask):
    # Pure-JAX reference sharing the exact same math (exact reciprocal).
    x_flat = _embed(params, input_ids)
    neg = _mask_to_neg(attention_mask)
    logits_pad = _forward_math(
        x_flat, neg, params["emb_ln"],
        params["wqkv"], params["bqkv"], params["wo"], params["bo"], params["ln"],
        params["w1"], params["b1"], params["w2"], params["b2"],
        params["pooler_w"], params["pooler_b"], params["cls_w"], params["cls_b"],
        recip=lambda v: 1.0 / v)
    return logits_pad[:, :NUM_LABELS]


if __name__ == "__main__":
    key = jax.random.PRNGKey(0)
    k_param, k_ids = jax.random.split(key)

    params = init_params(k_param)
    input_ids = jax.random.randint(k_ids, (B, S), 0, V, dtype=jnp.int32)
    attention_mask = jnp.ones((B, S), jnp.int32).at[1, S - 2:].set(0)  # pad tail of ex 1

    logits = bertweet_classifier_forward(params, input_ids, attention_mask,
                                         return_logits=True)
    preds = bertweet_classifier_forward(params, input_ids, attention_mask,
                                        return_logits=False)
    jax.block_until_ready((logits, preds))

    assert logits.shape == (B, NUM_LABELS) and logits.dtype == jnp.float32
    assert preds.shape == (B,)

    ref_logits = jax.block_until_ready(
        bertweet_reference(params, input_ids, attention_mask))
    np.testing.assert_allclose(np.asarray(logits), np.asarray(ref_logits),
                               atol=3e-3, rtol=5e-2)

    print("KERNEL_OK")
</pallas_src>

<mosaic_0001>
module attributes {stable_mosaic.version = 11 : i64} {
  func.func @bertweet_fwd_kernel(%arg0: memref<16x32xf32, #tpu.memory_space<vmem>>, %arg1: memref<2x1x8xf32, #tpu.memory_space<vmem>>, %arg2: memref<2x32xf32, #tpu.memory_space<vmem>>, %arg3: memref<2x32x96xbf16, #tpu.memory_space<vmem>>, %arg4: memref<2x1x96xf32, #tpu.memory_space<vmem>>, %arg5: memref<2x4x8x32xbf16, #tpu.memory_space<vmem>>, %arg6: memref<2x1x32xf32, #tpu.memory_space<vmem>>, %arg7: memref<2x4x32xf32, #tpu.memory_space<vmem>>, %arg8: memref<2x32x64xbf16, #tpu.memory_space<vmem>>, %arg9: memref<2x1x64xf32, #tpu.memory_space<vmem>>, %arg10: memref<2x64x32xbf16, #tpu.memory_space<vmem>>, %arg11: memref<2x1x32xf32, #tpu.memory_space<vmem>>, %arg12: memref<32x32xbf16, #tpu.memory_space<vmem>>, %arg13: memref<1x32xf32, #tpu.memory_space<vmem>>, %arg14: memref<32x128xbf16, #tpu.memory_space<vmem>>, %arg15: memref<1x128xf32, #tpu.memory_space<vmem>>, %arg16: memref<2x128xf32, #tpu.memory_space<vmem>>) attributes {dimension_semantics = [], scalar_prefetch = 0 : i64, scratch_operands = 0 : i64, tpu.core_type = #tpu.core_type<tc>} {
    %c0 = arith.constant 0 : index
    %c0_0 = arith.constant 0 : index
    %0 = vector.load %arg0[%c0, %c0_0] : memref<16x32xf32, #tpu.memory_space<vmem>>, vector<16x32xf32>
    %c0_1 = arith.constant 0 : index
    %c0_2 = arith.constant 0 : index
    %c0_3 = arith.constant 0 : index
    %1 = vector.load %arg1[%c0_1, %c0_2, %c0_3] : memref<2x1x8xf32, #tpu.memory_space<vmem>>, vector<2x1x8xf32>
    %c0_4 = arith.constant 0 : index
    %c0_5 = arith.constant 0 : index
    %2 = vector.load %arg2[%c0_4, %c0_5] : memref<2x32xf32, #tpu.memory_space<vmem>>, vector<2x32xf32>
    %c0_6 = arith.constant 0 : index
    %c0_7 = arith.constant 0 : index
    %c0_8 = arith.constant 0 : index
    %3 = vector.load %arg3[%c0_6, %c0_7, %c0_8] : memref<2x32x96xbf16, #tpu.memory_space<vmem>>, vector<2x32x96xbf16>
    %c0_9 = arith.constant 0 : index
    %c0_10 = arith.constant 0 : index
    %c0_11 = arith.constant 0 : index
    %4 = vector.load %arg4[%c0_9, %c0_10, %c0_11] : memref<2x1x96xf32, #tpu.memory_space<vmem>>, vector<2x1x96xf32>
    %c0_12 = arith.constant 0 : index
    %c0_13 = arith.constant 0 : index
    %c0_14 = arith.constant 0 : index
    %c0_15 = arith.constant 0 : index
    %5 = vector.load %arg5[%c0_12, %c0_13, %c0_14, %c0_15] : memref<2x4x8x32xbf16, #tpu.memory_space<vmem>>, vector<2x4x8x32xbf16>
    %c0_16 = arith.constant 0 : index
    %c0_17 = arith.constant 0 : index
    %c0_18 = arith.constant 0 : index
    %6 = vector.load %arg6[%c0_16, %c0_17, %c0_18] : memref<2x1x32xf32, #tpu.memory_space<vmem>>, vector<2x1x32xf32>
    %c0_19 = arith.constant 0 : index
    %c0_20 = arith.constant 0 : index
    %c0_21 = arith.constant 0 : index
    %7 = vector.load %arg7[%c0_19, %c0_20, %c0_21] : memref<2x4x32xf32, #tpu.memory_space<vmem>>, vector<2x4x32xf32>
    %c0_22 = arith.constant 0 : index
    %c0_23 = arith.constant 0 : index
    %c0_24 = arith.constant 0 : index
    %8 = vector.load %arg8[%c0_22, %c0_23, %c0_24] : memref<2x32x64xbf16, #tpu.memory_space<vmem>>, vector<2x32x64xbf16>
    %c0_25 = arith.constant 0 : index
    %c0_26 = arith.constant 0 : index
    %c0_27 = arith.constant 0 : index
    %9 = vector.load %arg9[%c0_25, %c0_26, %c0_27] : memref<2x1x64xf32, #tpu.memory_space<vmem>>, vector<2x1x64xf32>
    %c0_28 = arith.constant 0 : index
    %c0_29 = arith.constant 0 : index
    %c0_30 = arith.constant 0 : index
    %10 = vector.load %arg10[%c0_28, %c0_29, %c0_30] : memref<2x64x32xbf16, #tpu.memory_space<vmem>>, vector<2x64x32xbf16>
    %c0_31 = arith.constant 0 : index
    %c0_32 = arith.constant 0 : index
    %c0_33 = arith.constant 0 : index
    %11 = vector.load %arg11[%c0_31, %c0_32, %c0_33] : memref<2x1x32xf32, #tpu.memory_space<vmem>>, vector<2x1x32xf32>
    %c0_34 = arith.constant 0 : index
    %c0_35 = arith.constant 0 : index
    %12 = vector.load %arg12[%c0_34, %c0_35] : memref<32x32xbf16, #tpu.memory_space<vmem>>, vector<32x32xbf16>
    %c0_36 = arith.constant 0 : index
    %c0_37 = arith.constant 0 : index
    %13 = vector.load %arg13[%c0_36, %c0_37] : memref<1x32xf32, #tpu.memory_space<vmem>>, vector<1x32xf32>
    %c0_38 = arith.constant 0 : index
    %c0_39 = arith.constant 0 : index
    %14 = vector.load %arg14[%c0_38, %c0_39] : memref<32x128xbf16, #tpu.memory_space<vmem>>, vector<32x128xbf16>
    %c0_40 = arith.constant 0 : index
    %c0_41 = arith.constant 0 : index
    %15 = vector.load %arg15[%c0_40, %c0_41] : memref<1x128xf32, #tpu.memory_space<vmem>>, vector<1x128xf32>
    %16 = vector.extract_strided_slice %2 {offsets = [0, 0], sizes = [1, 32], strides = [1, 1]} : vector<2x32xf32> to vector<1x32xf32>
    %17 = vector.extract_strided_slice %2 {offsets = [1, 0], sizes = [1, 32], strides = [1, 1]} : vector<2x32xf32> to vector<1x32xf32>
    %cst = arith.constant dense<0.000000e+00> : vector<16xf32>
    %18 = vector.multi_reduction <add>, %0, %cst [1] : vector<16x32xf32> to vector<16xf32>
    %19 = vector.shape_cast %18 : vector<16xf32> to vector<16x1xf32>
    %cst_42 = arith.constant 3.200000e+01 : f32
    %20 = vector.broadcast %cst_42 : f32 to vector<16x1xf32>
    %21 = arith.divf %19, %20 : vector<16x1xf32>
    %22 = vector.broadcast %21 : vector<16x1xf32> to vector<16x32xf32>
    %23 = arith.subf %0, %22 : vector<16x32xf32>
    %24 = arith.mulf %23, %23 : vector<16x32xf32>
    %cst_43 = arith.constant dense<0.000000e+00> : vector<16xf32>
    %25 = vector.multi_reduction <add>, %24, %cst_43 [1] : vector<16x32xf32> to vector<16xf32>
    %26 = vector.shape_cast %25 : vector<16xf32> to vector<16x1xf32>
    %cst_44 = arith.constant 3.200000e+01 : f32
    %27 = vector.broadcast %cst_44 : f32 to vector<16x1xf32>
    %28 = arith.divf %26, %27 : vector<16x1xf32>
    %29 = vector.broadcast %21 : vector<16x1xf32> to vector<16x32xf32>
    %30 = arith.subf %0, %29 : vector<16x32xf32>
    %cst_45 = arith.constant 9.99999974E-6 : f32
    %31 = vector.broadcast %cst_45 : f32 to vector<16x1xf32>
    %32 = arith.addf %28, %31 : vector<16x1xf32>
    %33 = math.rsqrt %32 : vector<16x1xf32>
    %34 = vector.broadcast %33 : vector<16x1xf32> to vector<16x32xf32>
    %35 = arith.mulf %30, %34 : vector<16x32xf32>
    %36 = vector.broadcast %16 : vector<1x32xf32> to vector<16x32xf32>
    %37 = arith.mulf %35, %36 : vector<16x32xf32>
    %38 = vector.broadcast %17 : vector<1x32xf32> to vector<16x32xf32>
    %39 = arith.addf %37, %38 : vector<16x32xf32>
    %40 = arith.truncf %39 : vector<16x32xf32> to vector<16x32xbf16>
    %41 = vector.extract_strided_slice %3 {offsets = [0, 0, 0], sizes = [1, 32, 96], strides = [1, 1, 1]} : vector<2x32x96xbf16> to vector<1x32x96xbf16>
    %42 = vector.shape_cast %41 : vector<1x32x96xbf16> to vector<32x96xbf16>
    %cst_46 = arith.constant dense<0.000000e+00> : vector<16x96xf32>
    %43 = tpu.matmul %40, %42, %cst_46 {dimension_numbers = #tpu.dot_dimension_numbers<[1], [0], [0], [1], [0, 0, 1, 1], [], []>} : vector<16x32xbf16>, vector<32x96xbf16>, vector<16x96xf32> -> vector<16x96xf32>
    %44 = vector.extract_strided_slice %4 {offsets = [0, 0, 0], sizes = [1, 1, 96], strides = [1, 1, 1]} : vector<2x1x96xf32> to vector<1x1x96xf32>
    %45 = vector.shape_cast %44 : vector<1x1x96xf32> to vector<1x96xf32>
    %46 = vector.broadcast %45 : vector<1x96xf32> to vector<16x96xf32>
    %47 = arith.addf %43, %46 : vector<16x96xf32>
    %48 = vector.extract_strided_slice %47 {offsets = [0, 0], sizes = [16, 8], strides = [1, 1]} : vector<16x96xf32> to vector<16x8xf32>
    %49 = vector.shape_cast %48 : vector<16x8xf32> to vector<2x8x8xf32>
    %50 = arith.truncf %49 : vector<2x8x8xf32> to vector<2x8x8xbf16>
    %51 = vector.extract_strided_slice %47 {offsets = [0, 32], sizes = [16, 8], strides = [1, 1]} : vector<16x96xf32> to vector<16x8xf32>
    %52 = vector.shape_cast %51 : vector<16x8xf32> to vector<2x8x8xf32>
    %53 = arith.truncf %52 : vector<2x8x8xf32> to vector<2x8x8xbf16>
    %54 = vector.extract_strided_slice %47 {offsets = [0, 64], sizes = [16, 8], strides = [1, 1]} : vector<16x96xf32> to vector<16x8xf32>
    %55 = vector.shape_cast %54 : vector<16x8xf32> to vector<2x8x8xf32>
    %56 = arith.truncf %55 : vector<2x8x8xf32> to vector<2x8x8xbf16>
    "tpu.trace_start"() <{level = 10 : i32, message = "bqd,bkd->bqk"}> : () -> ()
    %cst_47 = arith.constant dense<0.000000e+00> : vector<2x8x8xf32>
    %57 = tpu.matmul %50, %53, %cst_47 {dimension_numbers = #tpu.dot_dimension_numbers<[2], [2], [1], [1], [0, 0, 0, 1, 1, 1], [0], [0]>} : vector<2x8x8xbf16>, vector<2x8x8xbf16>, vector<2x8x8xf32> -> vector<2x8x8xf32>
    "tpu.trace_stop"() : () -> ()
    %cst_48 = arith.constant 0.353553385 : f32
    %58 = vector.broadcast %cst_48 : f32 to vector<2x8x8xf32>
    %59 = arith.mulf %57, %58 : vector<2x8x8xf32>
    %60 = vector.broadcast %1 : vector<2x1x8xf32> to vector<2x8x8xf32>
    %61 = arith.addf %59, %60 : vector<2x8x8xf32>
    %cst_49 = arith.constant dense<0xFF800000> : vector<2x8xf32>
    %62 = vector.multi_reduction <maximumf>, %61, %cst_49 [2] : vector<2x8x8xf32> to vector<2x8xf32>
    %63 = vector.shape_cast %62 : vector<2x8xf32> to vector<2x8x1xf32>
    %64 = vector.broadcast %63 : vector<2x8x1xf32> to vector<2x8x8xf32>
    %65 = arith.subf %61, %64 : vector<2x8x8xf32>
    %66 = math.exp %65 : vector<2x8x8xf32>
    %cst_50 = arith.constant dense<0.000000e+00> : vector<2x8xf32>
    %67 = vector.multi_reduction <add>, %66, %cst_50 [2] : vector<2x8x8xf32> to vector<2x8xf32>
    %68 = vector.shape_cast %67 : vector<2x8xf32> to vector<2x8x1xf32>
    %69 = tpu.reciprocal %68 {approx = true} : vector<2x8x1xf32> -> vector<2x8x1xf32>
    %70 = vector.broadcast %69 : vector<2x8x1xf32> to vector<2x8x8xf32>
    %71 = arith.mulf %66, %70 : vector<2x8x8xf32>
    %72 = arith.truncf %71 : vector<2x8x8xf32> to vector<2x8x8xbf16>
    "tpu.trace_start"() <{level = 10 : i32, message = "bqk,bkd->bqd"}> : () -> ()
    %cst_51 = arith.constant dense<0.000000e+00> : vector<2x8x8xf32>
    %73 = tpu.matmul %72, %56, %cst_51 {dimension_numbers = #tpu.dot_dimension_numbers<[2], [1], [1], [2], [0, 0, 0, 1, 1, 2], [0], [0]>} : vector<2x8x8xbf16>, vector<2x8x8xbf16>, vector<2x8x8xf32> -> vector<2x8x8xf32>
    "tpu.trace_stop"() : () -> ()
    %74 = vector.shape_cast %73 : vector<2x8x8xf32> to vector<16x8xf32>
    %75 = arith.truncf %74 : vector<16x8xf32> to vector<16x8xbf16>
    %76 = vector.extract_strided_slice %5 {offsets = [0, 0, 0, 0], sizes = [1, 1, 8, 32], strides = [1, 1, 1, 1]} : vector<2x4x8x32xbf16> to vector<1x1x8x32xbf16>
    %77 = vector.shape_cast %76 : vector<1x1x8x32xbf16> to vector<8x32xbf16>
    %cst_52 = arith.constant dense<0.000000e+00> : vector<16x32xf32>
    %78 = tpu.matmul %75, %77, %cst_52 {dimension_numbers = #tpu.dot_dimension_numbers<[1], [0], [0], [1], [0, 0, 1, 1], [], []>} : vector<16x8xbf16>, vector<8x32xbf16>, vector<16x32xf32> -> vector<16x32xf32>
    %79 = vector.extract_strided_slice %47 {offsets = [0, 8], sizes = [16, 8], strides = [1, 1]} : vector<16x96xf32> to vector<16x8xf32>
    %80 = vector.shape_cast %79 : vector<16x8xf32> to vector<2x8x8xf32>
    %81 = arith.truncf %80 : vector<2x8x8xf32> to vector<2x8x8xbf16>
    %82 = vector.extract_strided_slice %47 {offsets = [0, 40], sizes = [16, 8], strides = [1, 1]} : vector<16x96xf32> to vector<16x8xf32>
    %83 = vector.shape_cast %82 : vector<16x8xf32> to vector<2x8x8xf32>
    %84 = arith.truncf %83 : vector<2x8x8xf32> to vector<2x8x8xbf16>
    %85 = vector.extract_strided_slice %47 {offsets = [0, 72], sizes = [16, 8], strides = [1, 1]} : vector<16x96xf32> to vector<16x8xf32>
    %86 = vector.shape_cast %85 : vector<16x8xf32> to vector<2x8x8xf32>
    %87 = arith.truncf %86 : vector<2x8x8xf32> to vector<2x8x8xbf16>
    "tpu.trace_start"() <{level = 10 : i32, message = "bqd,bkd->bqk"}> : () -> ()
    %cst_53 = arith.constant dense<0.000000e+00> : vector<2x8x8xf32>
    %88 = tpu.matmul %81, %84, %cst_53 {dimension_numbers = #tpu.dot_dimension_numbers<[2], [2], [1], [1], [0, 0, 0, 1, 1, 1], [0], [0]>} : vector<2x8x8xbf16>, vector<2x8x8xbf16>, vector<2x8x8xf32> -> vector<2x8x8xf32>
    "tpu.trace_stop"() : () -> ()
    %cst_54 = arith.constant 0.353553385 : f32
    %89 = vector.broadcast %cst_54 : f32 to vector<2x8x8xf32>
    %90 = arith.mulf %88, %89 : vector<2x8x8xf32>
    %91 = vector.broadcast %1 : vector<2x1x8xf32> to vector<2x8x8xf32>
    %92 = arith.addf %90, %91 : vector<2x8x8xf32>
    %cst_55 = arith.constant dense<0xFF800000> : vector<2x8xf32>
    %93 = vector.multi_reduction <maximumf>, %92, %cst_55 [2] : vector<2x8x8xf32> to vector<2x8xf32>
    %94 = vector.shape_cast %93 : vector<2x8xf32> to vector<2x8x1xf32>
    %95 = vector.broadcast %94 : vector<2x8x1xf32> to vector<2x8x8xf32>
    %96 = arith.subf %92, %95 : vector<2x8x8xf32>
    %97 = math.exp %96 : vector<2x8x8xf32>
    %cst_56 = arith.constant dense<0.000000e+00> : vector<2x8xf32>
    %98 = vector.multi_reduction <add>, %97, %cst_56 [2] : vector<2x8x8xf32> to vector<2x8xf32>
    %99 = vector.shape_cast %98 : vector<2x8xf32> to vector<2x8x1xf32>
    %100 = tpu.reciprocal %99 {approx = true} : vector<2x8x1xf32> -> vector<2x8x1xf32>
    %101 = vector.broadcast %100 : vector<2x8x1xf32> to vector<2x8x8xf32>
    %102 = arith.mulf %97, %101 : vector<2x8x8xf32>
    %103 = arith.truncf %102 : vector<2x8x8xf32> to vector<2x8x8xbf16>
    "tpu.trace_start"() <{level = 10 : i32, message = "bqk,bkd->bqd"}> : () -> ()
    %cst_57 = arith.constant dense<0.000000e+00> : vector<2x8x8xf32>
    %104 = tpu.matmul %103, %87, %cst_57 {dimension_numbers = #tpu.dot_dimension_numbers<[2], [1], [1], [2], [0, 0, 0, 1, 1, 2], [0], [0]>} : vector<2x8x8xbf16>, vector<2x8x8xbf16>, vector<2x8x8xf32> -> vector<2x8x8xf32>
    "tpu.trace_stop"() : () -> ()
    %105 = vector.shape_cast %104 : vector<2x8x8xf32> to vector<16x8xf32>
    %106 = arith.truncf %105 : vector<16x8xf32> to vector<16x8xbf16>
    %107 = vector.extract_strided_slice %5 {offsets = [0, 1, 0, 0], sizes = [1, 1, 8, 32], strides = [1, 1, 1, 1]} : vector<2x4x8x32xbf16> to vector<1x1x8x32xbf16>
    %108 = vector.shape_cast %107 : vector<1x1x8x32xbf16> to vector<8x32xbf16>
    %cst_58 = arith.constant dense<0.000000e+00> : vector<16x32xf32>
    %109 = tpu.matmul %106, %108, %cst_58 {dimension_numbers = #tpu.dot_dimension_numbers<[1], [0], [0], [1], [0, 0, 1, 1], [], []>} : vector<16x8xbf16>, vector<8x32xbf16>, vector<16x32xf32> -> vector<16x32xf32>
    %110 = arith.addf %78, %109 : vector<16x32xf32>
    %111 = vector.extract_strided_slice %47 {offsets = [0, 16], sizes = [16, 8], strides = [1, 1]} : vector<16x96xf32> to vector<16x8xf32>
    %112 = vector.shape_cast %111 : vector<16x8xf32> to vector<2x8x8xf32>
    %113 = arith.truncf %112 : vector<2x8x8xf32> to vector<2x8x8xbf16>
    %114 = vector.extract_strided_slice %47 {offsets = [0, 48], sizes = [16, 8], strides = [1, 1]} : vector<16x96xf32> to vector<16x8xf32>
    %115 = vector.shape_cast %114 : vector<16x8xf32> to vector<2x8x8xf32>
    %116 = arith.truncf %115 : vector<2x8x8xf32> to vector<2x8x8xbf16>
    %117 = vector.extract_strided_slice %47 {offsets = [0, 80], sizes = [16, 8], strides = [1, 1]} : vector<16x96xf32> to vector<16x8xf32>
    %118 = vector.shape_cast %117 : vector<16x8xf32> to vector<2x8x8xf32>
    %119 = arith.truncf %118 : vector<2x8x8xf32> to vector<2x8x8xbf16>
    "tpu.trace_start"() <{level = 10 : i32, message = "bqd,bkd->bqk"}> : () -> ()
    %cst_59 = arith.constant dense<0.000000e+00> : vector<2x8x8xf32>
    %120 = tpu.matmul %113, %116, %cst_59 {dimension_numbers = #tpu.dot_dimension_numbers<[2], [2], [1], [1], [0, 0, 0, 1, 1, 1], [0], [0]>} : vector<2x8x8xbf16>, vector<2x8x8xbf16>, vector<2x8x8xf32> -> vector<2x8x8xf32>
    "tpu.trace_stop"() : () -> ()
    %cst_60 = arith.constant 0.353553385 : f32
    %121 = vector.broadcast %cst_60 : f32 to vector<2x8x8xf32>
    %122 = arith.mulf %120, %121 : vector<2x8x8xf32>
    %123 = vector.broadcast %1 : vector<2x1x8xf32> to vector<2x8x8xf32>
    %124 = arith.addf %122, %123 : vector<2x8x8xf32>
    %cst_61 = arith.constant dense<0xFF800000> : vector<2x8xf32>
    %125 = vector.multi_reduction <maximumf>, %124, %cst_61 [2] : vector<2x8x8xf32> to vector<2x8xf32>
    %126 = vector.shape_cast %125 : vector<2x8xf32> to vector<2x8x1xf32>
    %127 = vector.broadcast %126 : vector<2x8x1xf32> to vector<2x8x8xf32>
    %128 = arith.subf %124, %127 : vector<2x8x8xf32>
    %129 = math.exp %128 : vector<2x8x8xf32>
    %cst_62 = arith.constant dense<0.000000e+00> : vector<2x8xf32>
    %130 = vector.multi_reduction <add>, %129, %cst_62 [2] : vector<2x8x8xf32> to vector<2x8xf32>
    %131 = vector.shape_cast %130 : vector<2x8xf32> to vector<2x8x1xf32>
    %132 = tpu.reciprocal %131 {approx = true} : vector<2x8x1xf32> -> vector<2x8x1xf32>
    %133 = vector.broadcast %132 : vector<2x8x1xf32> to vector<2x8x8xf32>
    %134 = arith.mulf %129, %133 : vector<2x8x8xf32>
    %135 = arith.truncf %134 : vector<2x8x8xf32> to vector<2x8x8xbf16>
    "tpu.trace_start"() <{level = 10 : i32, message = "bqk,bkd->bqd"}> : () -> ()
    %cst_63 = arith.constant dense<0.000000e+00> : vector<2x8x8xf32>
    %136 = tpu.matmul %135, %119, %cst_63 {dimension_numbers = #tpu.dot_dimension_numbers<[2], [1], [1], [2], [0, 0, 0, 1, 1, 2], [0], [0]>} : vector<2x8x8xbf16>, vector<2x8x8xbf16>, vector<2x8x8xf32> -> vector<2x8x8xf32>
    "tpu.trace_stop"() : () -> ()
    %137 = vector.shape_cast %136 : vector<2x8x8xf32> to vector<16x8xf32>
    %138 = arith.truncf %137 : vector<16x8xf32> to vector<16x8xbf16>
    %139 = vector.extract_strided_slice %5 {offsets = [0, 2, 0, 0], sizes = [1, 1, 8, 32], strides = [1, 1, 1, 1]} : vector<2x4x8x32xbf16> to vector<1x1x8x32xbf16>
    %140 = vector.shape_cast %139 : vector<1x1x8x32xbf16> to vector<8x32xbf16>
    %cst_64 = arith.constant dense<0.000000e+00> : vector<16x32xf32>
    %141 = tpu.matmul %138, %140, %cst_64 {dimension_numbers = #tpu.dot_dimension_numbers<[1], [0], [0], [1], [0, 0, 1, 1], [], []>} : vector<16x8xbf16>, vector<8x32xbf16>, vector<16x32xf32> -> vector<16x32xf32>
    %142 = arith.addf %110, %141 : vector<16x32xf32>
    %143 = vector.extract_strided_slice %47 {offsets = [0, 24], sizes = [16, 8], strides = [1, 1]} : vector<16x96xf32> to vector<16x8xf32>
    %144 = vector.shape_cast %143 : vector<16x8xf32> to vector<2x8x8xf32>
    %145 = arith.truncf %144 : vector<2x8x8xf32> to vector<2x8x8xbf16>
    %146 = vector.extract_strided_slice %47 {offsets = [0, 56], sizes = [16, 8], strides = [1, 1]} : vector<16x96xf32> to vector<16x8xf32>
    %147 = vector.shape_cast %146 : vector<16x8xf32> to vector<2x8x8xf32>
    %148 = arith.truncf %147 : vector<2x8x8xf32> to vector<2x8x8xbf16>
    %149 = vector.extract_strided_slice %47 {offsets = [0, 88], sizes = [16, 8], strides = [1, 1]} : vector<16x96xf32> to vector<16x8xf32>
    %150 = vector.shape_cast %149 : vector<16x8xf32> to vector<2x8x8xf32>
    %151 = arith.truncf %150 : vector<2x8x8xf32> to vector<2x8x8xbf16>
    "tpu.trace_start"() <{level = 10 : i32, message = "bqd,bkd->bqk"}> : () -> ()
    %cst_65 = arith.constant dense<0.000000e+00> : vector<2x8x8xf32>
    %152 = tpu.matmul %145, %148, %cst_65 {dimension_numbers = #tpu.dot_dimension_numbers<[2], [2], [1], [1], [0, 0, 0, 1, 1, 1], [0], [0]>} : vector<2x8x8xbf16>, vector<2x8x8xbf16>, vector<2x8x8xf32> -> vector<2x8x8xf32>
    "tpu.trace_stop"() : () -> ()
    %cst_66 = arith.constant 0.353553385 : f32
    %153 = vector.broadcast %cst_66 : f32 to vector<2x8x8xf32>
    %154 = arith.mulf %152, %153 : vector<2x8x8xf32>
    %155 = vector.broadcast %1 : vector<2x1x8xf32> to vector<2x8x8xf32>
    %156 = arith.addf %154, %155 : vector<2x8x8xf32>
    %cst_67 = arith.constant dense<0xFF800000> : vector<2x8xf32>
    %157 = vector.multi_reduction <maximumf>, %156, %cst_67 [2] : vector<2x8x8xf32> to vector<2x8xf32>
    %158 = vector.shape_cast %157 : vector<2x8xf32> to vector<2x8x1xf32>
    %159 = vector.broadcast %158 : vector<2x8x1xf32> to vector<2x8x8xf32>
    %160 = arith.subf %156, %159 : vector<2x8x8xf32>
    %161 = math.exp %160 : vector<2x8x8xf32>
    %cst_68 = arith.constant dense<0.000000e+00> : vector<2x8xf32>
    %162 = vector.multi_reduction <add>, %161, %cst_68 [2] : vector<2x8x8xf32> to vector<2x8xf32>
    %163 = vector.shape_cast %162 : vector<2x8xf32> to vector<2x8x1xf32>
    %164 = tpu.reciprocal %163 {approx = true} : vector<2x8x1xf32> -> vector<2x8x1xf32>
    %165 = vector.broadcast %164 : vector<2x8x1xf32> to vector<2x8x8xf32>
    %166 = arith.mulf %161, %165 : vector<2x8x8xf32>
    %167 = arith.truncf %166 : vector<2x8x8xf32> to vector<2x8x8xbf16>
    "tpu.trace_start"() <{level = 10 : i32, message = "bqk,bkd->bqd"}> : () -> ()
    %cst_69 = arith.constant dense<0.000000e+00> : vector<2x8x8xf32>
    %168 = tpu.matmul %167, %151, %cst_69 {dimension_numbers = #tpu.dot_dimension_numbers<[2], [1], [1], [2], [0, 0, 0, 1, 1, 2], [0], [0]>} : vector<2x8x8xbf16>, vector<2x8x8xbf16>, vector<2x8x8xf32> -> vector<2x8x8xf32>
    "tpu.trace_stop"() : () -> ()
    %169 = vector.shape_cast %168 : vector<2x8x8xf32> to vector<16x8xf32>
    %170 = arith.truncf %169 : vector<16x8xf32> to vector<16x8xbf16>
    %171 = vector.extract_strided_slice %5 {offsets = [0, 3, 0, 0], sizes = [1, 1, 8, 32], strides = [1, 1, 1, 1]} : vector<2x4x8x32xbf16> to vector<1x1x8x32xbf16>
    %172 = vector.shape_cast %171 : vector<1x1x8x32xbf16> to vector<8x32xbf16>
    %cst_70 = arith.constant dense<0.000000e+00> : vector<16x32xf32>
    %173 = tpu.matmul %170, %172, %cst_70 {dimension_numbers = #tpu.dot_dimension_numbers<[1], [0], [0], [1], [0, 0, 1, 1], [], []>} : vector<16x8xbf16>, vector<8x32xbf16>, vector<16x32xf32> -> vector<16x32xf32>
    %174 = arith.addf %142, %173 : vector<16x32xf32>
    %175 = vector.extract_strided_slice %6 {offsets = [0, 0, 0], sizes = [1, 1, 32], strides = [1, 1, 1]} : vector<2x1x32xf32> to vector<1x1x32xf32>
    %176 = vector.shape_cast %175 : vector<1x1x32xf32> to vector<1x32xf32>
    %177 = vector.broadcast %176 : vector<1x32xf32> to vector<16x32xf32>
    %178 = arith.addf %174, %177 : vector<16x32xf32>
    %179 = vector.extract_strided_slice %7 {offsets = [0, 0, 0], sizes = [1, 4, 32], strides = [1, 1, 1]} : vector<2x4x32xf32> to vector<1x4x32xf32>
    %180 = vector.shape_cast %179 : vector<1x4x32xf32> to vector<4x32xf32>
    %181 = arith.addf %39, %178 : vector<16x32xf32>
    %182 = vector.extract_strided_slice %180 {offsets = [0, 0], sizes = [1, 32], strides = [1, 1]} : vector<4x32xf32> to vector<1x32xf32>
    %183 = vector.extract_strided_slice %180 {offsets = [1, 0], sizes = [1, 32], strides = [1, 1]} : vector<4x32xf32> to vector<1x32xf32>
    %cst_71 = arith.constant dense<0.000000e+00> : vector<16xf32>
    %184 = vector.multi_reduction <add>, %181, %cst_71 [1] : vector<16x32xf32> to vector<16xf32>
    %185 = vector.shape_cast %184 : vector<16xf32> to vector<16x1xf32>
    %cst_72 = arith.constant 3.200000e+01 : f32
    %186 = vector.broadcast %cst_72 : f32 to vector<16x1xf32>
    %187 = arith.divf %185, %186 : vector<16x1xf32>
    %188 = vector.broadcast %187 : vector<16x1xf32> to vector<16x32xf32>
    %189 = arith.subf %181, %188 : vector<16x32xf32>
    %190 = arith.mulf %189, %189 : vector<16x32xf32>
    %cst_73 = arith.constant dense<0.000000e+00> : vector<16xf32>
    %191 = vector.multi_reduction <add>, %190, %cst_73 [1] : vector<16x32xf32> to vector<16xf32>
    %192 = vector.shape_cast %191 : vector<16xf32> to vector<16x1xf32>
    %cst_74 = arith.constant 3.200000e+01 : f32
    %193 = vector.broadcast %cst_74 : f32 to vector<16x1xf32>
    %194 = arith.divf %192, %193 : vector<16x1xf32>
    %195 = vector.broadcast %187 : vector<16x1xf32> to vector<16x32xf32>
    %196 = arith.subf %181, %195 : vector<16x32xf32>
    %cst_75 = arith.constant 9.99999974E-6 : f32
    %197 = vector.broadcast %cst_75 : f32 to vector<16x1xf32>
    %198 = arith.addf %194, %197 : vector<16x1xf32>
    %199 = math.rsqrt %198 : vector<16x1xf32>
    %200 = vector.broadcast %199 : vector<16x1xf32> to vector<16x32xf32>
    %201 = arith.mulf %196, %200 : vector<16x32xf32>
    %202 = vector.broadcast %182 : vector<1x32xf32> to vector<16x32xf32>
    %203 = arith.mulf %201, %202 : vector<16x32xf32>
    %204 = vector.broadcast %183 : vector<1x32xf32> to vector<16x32xf32>
    %205 = arith.addf %203, %204 : vector<16x32xf32>
    %206 = arith.truncf %205 : vector<16x32xf32> to vector<16x32xbf16>
    %207 = vector.extract_strided_slice %8 {offsets = [0, 0, 0], sizes = [1, 32, 64], strides = [1, 1, 1]} : vector<2x32x64xbf16> to vector<1x32x64xbf16>
    %208 = vector.shape_cast %207 : vector<1x32x64xbf16> to vector<32x64xbf16>
    %cst_76 = arith.constant dense<0.000000e+00> : vector<16x64xf32>
    %209 = tpu.matmul %206, %208, %cst_76 {dimension_numbers = #tpu.dot_dimension_numbers<[1], [0], [0], [1], [0, 0, 1, 1], [], []>} : vector<16x32xbf16>, vector<32x64xbf16>, vector<16x64xf32> -> vector<16x64xf32>
    %210 = vector.extract_strided_slice %9 {offsets = [0, 0, 0], sizes = [1, 1, 64], strides = [1, 1, 1]} : vector<2x1x64xf32> to vector<1x1x64xf32>
    %211 = vector.shape_cast %210 : vector<1x1x64xf32> to vector<1x64xf32>
    %212 = vector.broadcast %211 : vector<1x64xf32> to vector<16x64xf32>
    %213 = arith.addf %209, %212 : vector<16x64xf32>
    %214 = arith.mulf %213, %213 : vector<16x64xf32>
    %215 = arith.mulf %213, %214 : vector<16x64xf32>
    %cst_77 = arith.constant 4.471500e-02 : f32
    %216 = vector.broadcast %cst_77 : f32 to vector<16x64xf32>
    %217 = arith.mulf %216, %215 : vector<16x64xf32>
    %218 = arith.addf %213, %217 : vector<16x64xf32>
    %cst_78 = arith.constant 0.797884583 : f32
    %219 = vector.broadcast %cst_78 : f32 to vector<16x64xf32>
    %220 = arith.mulf %219, %218 : vector<16x64xf32>
    %221 = math.tanh %220 : vector<16x64xf32>
    %cst_79 = arith.constant 1.000000e+00 : f32
    %222 = vector.broadcast %cst_79 : f32 to vector<16x64xf32>
    %223 = arith.addf %222, %221 : vector<16x64xf32>
    %cst_80 = arith.constant 5.000000e-01 : f32
    %224 = vector.broadcast %cst_80 : f32 to vector<16x64xf32>
    %225 = arith.mulf %224, %223 : vector<16x64xf32>
    %226 = arith.mulf %213, %225 : vector<16x64xf32>
    %227 = arith.truncf %226 : vector<16x64xf32> to vector<16x64xbf16>
    %228 = vector.extract_strided_slice %10 {offsets = [0, 0, 0], sizes = [1, 64, 32], strides = [1, 1, 1]} : vector<2x64x32xbf16> to vector<1x64x32xbf16>
    %229 = vector.shape_cast %228 : vector<1x64x32xbf16> to vector<64x32xbf16>
    %cst_81 = arith.constant dense<0.000000e+00> : vector<16x32xf32>
    %230 = tpu.matmul %227, %229, %cst_81 {dimension_numbers = #tpu.dot_dimension_numbers<[1], [0], [0], [1], [0, 0, 1, 1], [], []>} : vector<16x64xbf16>, vector<64x32xbf16>, vector<16x32xf32> -> vector<16x32xf32>
    %231 = vector.extract_strided_slice %11 {offsets = [0, 0, 0], sizes = [1, 1, 32], strides = [1, 1, 1]} : vector<2x1x32xf32> to vector<1x1x32xf32>
    %232 = vector.shape_cast %231 : vector<1x1x32xf32> to vector<1x32xf32>
    %233 = vector.broadcast %232 : vector<1x32xf32> to vector<16x32xf32>
    %234 = arith.addf %230, %233 : vector<16x32xf32>
    %235 = arith.addf %205, %234 : vector<16x32xf32>
    %236 = vector.extract_strided_slice %180 {offsets = [2, 0], sizes = [1, 32], strides = [1, 1]} : vector<4x32xf32> to vector<1x32xf32>
    %237 = vector.extract_strided_slice %180 {offsets = [3, 0], sizes = [1, 32], strides = [1, 1]} : vector<4x32xf32> to vector<1x32xf32>
    %cst_82 = arith.constant dense<0.000000e+00> : vector<16xf32>
    %238 = vector.multi_reduction <add>, %235, %cst_82 [1] : vector<16x32xf32> to vector<16xf32>
    %239 = vector.shape_cast %238 : vector<16xf32> to vector<16x1xf32>
    %cst_83 = arith.constant 3.200000e+01 : f32
    %240 = vector.broadcast %cst_83 : f32 to vector<16x1xf32>
    %241 = arith.divf %239, %240 : vector<16x1xf32>
    %242 = vector.broadcast %241 : vector<16x1xf32> to vector<16x32xf32>
    %243 = arith.subf %235, %242 : vector<16x32xf32>
    %244 = arith.mulf %243, %243 : vector<16x32xf32>
    %cst_84 = arith.constant dense<0.000000e+00> : vector<16xf32>
    %245 = vector.multi_reduction <add>, %244, %cst_84 [1] : vector<16x32xf32> to vector<16xf32>
    %246 = vector.shape_cast %245 : vector<16xf32> to vector<16x1xf32>
    %cst_85 = arith.constant 3.200000e+01 : f32
    %247 = vector.broadcast %cst_85 : f32 to vector<16x1xf32>
    %248 = arith.divf %246, %247 : vector<16x1xf32>
    %249 = vector.broadcast %241 : vector<16x1xf32> to vector<16x32xf32>
    %250 = arith.subf %235, %249 : vector<16x32xf32>
    %cst_86 = arith.constant 9.99999974E-6 : f32
    %251 = vector.broadcast %cst_86 : f32 to vector<16x1xf32>
    %252 = arith.addf %248, %251 : vector<16x1xf32>
    %253 = math.rsqrt %252 : vector<16x1xf32>
    %254 = vector.broadcast %253 : vector<16x1xf32> to vector<16x32xf32>
    %255 = arith.mulf %250, %254 : vector<16x32xf32>
    %256 = vector.broadcast %236 : vector<1x32xf32> to vector<16x32xf32>
    %257 = arith.mulf %255, %256 : vector<16x32xf32>
    %258 = vector.broadcast %237 : vector<1x32xf32> to vector<16x32xf32>
    %259 = arith.addf %257, %258 : vector<16x32xf32>
    %260 = arith.truncf %259 : vector<16x32xf32> to vector<16x32xbf16>
    %261 = vector.extract_strided_slice %3 {offsets = [1, 0, 0], sizes = [1, 32, 96], strides = [1, 1, 1]} : vector<2x32x96xbf16> to vector<1x32x96xbf16>
    %262 = vector.shape_cast %261 : vector<1x32x96xbf16> to vector<32x96xbf16>
    %cst_87 = arith.constant dense<0.000000e+00> : vector<16x96xf32>
    %263 = tpu.matmul %260, %262, %cst_87 {dimension_numbers = #tpu.dot_dimension_numbers<[1], [0], [0], [1], [0, 0, 1, 1], [], []>} : vector<16x32xbf16>, vector<32x96xbf16>, vector<16x96xf32> -> vector<16x96xf32>
    %264 = vector.extract_strided_slice %4 {offsets = [1, 0, 0], sizes = [1, 1, 96], strides = [1, 1, 1]} : vector<2x1x96xf32> to vector<1x1x96xf32>
    %265 = vector.shape_cast %264 : vector<1x1x96xf32> to vector<1x96xf32>
    %266 = vector.broadcast %265 : vector<1x96xf32> to vector<16x96xf32>
    %267 = arith.addf %263, %266 : vector<16x96xf32>
    %268 = vector.extract_strided_slice %267 {offsets = [0, 0], sizes = [16, 8], strides = [1, 1]} : vector<16x96xf32> to vector<16x8xf32>
    %269 = vector.shape_cast %268 : vector<16x8xf32> to vector<2x8x8xf32>
    %270 = arith.truncf %269 : vector<2x8x8xf32> to vector<2x8x8xbf16>
    %271 = vector.extract_strided_slice %267 {offsets = [0, 32], sizes = [16, 8], strides = [1, 1]} : vector<16x96xf32> to vector<16x8xf32>
    %272 = vector.shape_cast %271 : vector<16x8xf32> to vector<2x8x8xf32>
    %273 = arith.truncf %272 : vector<2x8x8xf32> to vector<2x8x8xbf16>
    %274 = vector.extract_strided_slice %267 {offsets = [0, 64], sizes = [16, 8], strides = [1, 1]} : vector<16x96xf32> to vector<16x8xf32>
    %275 = vector.shape_cast %274 : vector<16x8xf32> to vector<2x8x8xf32>
    %276 = arith.truncf %275 : vector<2x8x8xf32> to vector<2x8x8xbf16>
    "tpu.trace_start"() <{level = 10 : i32, message = "bqd,bkd->bqk"}> : () -> ()
    %cst_88 = arith.constant dense<0.000000e+00> : vector<2x8x8xf32>
    %277 = tpu.matmul %270, %273, %cst_88 {dimension_numbers = #tpu.dot_dimension_numbers<[2], [2], [1], [1], [0, 0, 0, 1, 1, 1], [0], [0]>} : vector<2x8x8xbf16>, vector<2x8x8xbf16>, vector<2x8x8xf32> -> vector<2x8x8xf32>
    "tpu.trace_stop"() : () -> ()
    %cst_89 = arith.constant 0.353553385 : f32
    %278 = vector.broadcast %cst_89 : f32 to vector<2x8x8xf32>
    %279 = arith.mulf %277, %278 : vector<2x8x8xf32>
    %280 = vector.broadcast %1 : vector<2x1x8xf32> to vector<2x8x8xf32>
    %281 = arith.addf %279, %280 : vector<2x8x8xf32>
    %cst_90 = arith.constant dense<0xFF800000> : vector<2x8xf32>
    %282 = vector.multi_reduction <maximumf>, %281, %cst_90 [2] : vector<2x8x8xf32> to vector<2x8xf32>
    %283 = vector.shape_cast %282 : vector<2x8xf32> to vector<2x8x1xf32>
    %284 = vector.broadcast %283 : vector<2x8x1xf32> to vector<2x8x8xf32>
    %285 = arith.subf %281, %284 : vector<2x8x8xf32>
    %286 = math.exp %285 : vector<2x8x8xf32>
    %cst_91 = arith.constant dense<0.000000e+00> : vector<2x8xf32>
    %287 = vector.multi_reduction <add>, %286, %cst_91 [2] : vector<2x8x8xf32> to vector<2x8xf32>
    %288 = vector.shape_cast %287 : vector<2x8xf32> to vector<2x8x1xf32>
    %289 = tpu.reciprocal %288 {approx = true} : vector<2x8x1xf32> -> vector<2x8x1xf32>
    %290 = vector.broadcast %289 : vector<2x8x1xf32> to vector<2x8x8xf32>
    %291 = arith.mulf %286, %290 : vector<2x8x8xf32>
    %292 = arith.truncf %291 : vector<2x8x8xf32> to vector<2x8x8xbf16>
    "tpu.trace_start"() <{level = 10 : i32, message = "bqk,bkd->bqd"}> : () -> ()
    %cst_92 = arith.constant dense<0.000000e+00> : vector<2x8x8xf32>
    %293 = tpu.matmul %292, %276, %cst_92 {dimension_numbers = #tpu.dot_dimension_numbers<[2], [1], [1], [2], [0, 0, 0, 1, 1, 2], [0], [0]>} : vector<2x8x8xbf16>, vector<2x8x8xbf16>, vector<2x8x8xf32> -> vector<2x8x8xf32>
    "tpu.trace_stop"() : () -> ()
    %294 = vector.shape_cast %293 : vector<2x8x8xf32> to vector<16x8xf32>
    %295 = arith.truncf %294 : vector<16x8xf32> to vector<16x8xbf16>
    %296 = vector.extract_strided_slice %5 {offsets = [1, 0, 0, 0], sizes = [1, 1, 8, 32], strides = [1, 1, 1, 1]} : vector<2x4x8x32xbf16> to vector<1x1x8x32xbf16>
    %297 = vector.shape_cast %296 : vector<1x1x8x32xbf16> to vector<8x32xbf16>
    %cst_93 = arith.constant dense<0.000000e+00> : vector<16x32xf32>
    %298 = tpu.matmul %295, %297, %cst_93 {dimension_numbers = #tpu.dot_dimension_numbers<[1], [0], [0], [1], [0, 0, 1, 1], [], []>} : vector<16x8xbf16>, vector<8x32xbf16>, vector<16x32xf32> -> vector<16x32xf32>
    %299 = vector.extract_strided_slice %267 {offsets = [0, 8], sizes = [16, 8], strides = [1, 1]} : vector<16x96xf32> to vector<16x8xf32>
    %300 = vector.shape_cast %299 : vector<16x8xf32> to vector<2x8x8xf32>
    %301 = arith.truncf %300 : vector<2x8x8xf32> to vector<2x8x8xbf16>
    %302 = vector.extract_strided_slice %267 {offsets = [0, 40], sizes = [16, 8], strides = [1, 1]} : vector<16x96xf32> to vector<16x8xf32>
    %303 = vector.shape_cast %302 : vector<16x8xf32> to vector<2x8x8xf32>
    %304 = arith.truncf %303 : vector<2x8x8xf32> to vector<2x8x8xbf16>
    %305 = vector.extract_strided_slice %267 {offsets = [0, 72], sizes = [16, 8], strides = [1, 1]} : vector<16x96xf32> to vector<16x8xf32>
    %306 = vector.shape_cast %305 : vector<16x8xf32> to vector<2x8x8xf32>
    %307 = arith.truncf %306 : vector<2x8x8xf32> to vector<2x8x8xbf16>
    "tpu.trace_start"() <{level = 10 : i32, message = "bqd,bkd->bqk"}> : () -> ()
    %cst_94 = arith.constant dense<0.000000e+00> : vector<2x8x8xf32>
    %308 = tpu.matmul %301, %304, %cst_94 {dimension_numbers = #tpu.dot_dimension_numbers<[2], [2], [1], [1], [0, 0, 0, 1, 1, 1], [0], [0]>} : vector<2x8x8xbf16>, vector<2x8x8xbf16>, vector<2x8x8xf32> -> vector<2x8x8xf32>
    "tpu.trace_stop"() : () -> ()
    %cst_95 = arith.constant 0.353553385 : f32
    %309 = vector.broadcast %cst_95 : f32 to vector<2x8x8xf32>
    %310 = arith.mulf %308, %309 : vector<2x8x8xf32>
    %311 = vector.broadcast %1 : vector<2x1x8xf32> to vector<2x8x8xf32>
    %312 = arith.addf %310, %311 : vector<2x8x8xf32>
    %cst_96 = arith.constant dense<0xFF800000> : vector<2x8xf32>
    %313 = vector.multi_reduction <maximumf>, %312, %cst_96 [2] : vector<2x8x8xf32> to vector<2x8xf32>
    %314 = vector.shape_cast %313 : vector<2x8xf32> to vector<2x8x1xf32>
    %315 = vector.broadcast %314 : vector<2x8x1xf32> to vector<2x8x8xf32>
    %316 = arith.subf %312, %315 : vector<2x8x8xf32>
    %317 = math.exp %316 : vector<2x8x8xf32>
    %cst_97 = arith.constant dense<0.000000e+00> : vector<2x8xf32>
    %318 = vector.multi_reduction <add>, %317, %cst_97 [2] : vector<2x8x8xf32> to vector<2x8xf32>
    %319 = vector.shape_cast %318 : vector<2x8xf32> to vector<2x8x1xf32>
    %320 = tpu.reciprocal %319 {approx = true} : vector<2x8x1xf32> -> vector<2x8x1xf32>
    %321 = vector.broadcast %320 : vector<2x8x1xf32> to vector<2x8x8xf32>
    %322 = arith.mulf %317, %321 : vector<2x8x8xf32>
    %323 = arith.truncf %322 : vector<2x8x8xf32> to vector<2x8x8xbf16>
    "tpu.trace_start"() <{level = 10 : i32, message = "bqk,bkd->bqd"}> : () -> ()
    %cst_98 = arith.constant dense<0.000000e+00> : vector<2x8x8xf32>
    %324 = tpu.matmul %323, %307, %cst_98 {dimension_numbers = #tpu.dot_dimension_numbers<[2], [1], [1], [2], [0, 0, 0, 1, 1, 2], [0], [0]>} : vector<2x8x8xbf16>, vector<2x8x8xbf16>, vector<2x8x8xf32> -> vector<2x8x8xf32>
    "tpu.trace_stop"() : () -> ()
    %325 = vector.shape_cast %324 : vector<2x8x8xf32> to vector<16x8xf32>
    %326 = arith.truncf %325 : vector<16x8xf32> to vector<16x8xbf16>
    %327 = vector.extract_strided_slice %5 {offsets = [1, 1, 0, 0], sizes = [1, 1, 8, 32], strides = [1, 1, 1, 1]} : vector<2x4x8x32xbf16> to vector<1x1x8x32xbf16>
    %328 = vector.shape_cast %327 : vector<1x1x8x32xbf16> to vector<8x32xbf16>
    %cst_99 = arith.constant dense<0.000000e+00> : vector<16x32xf32>
    %329 = tpu.matmul %326, %328, %cst_99 {dimension_numbers = #tpu.dot_dimension_numbers<[1], [0], [0], [1], [0, 0, 1, 1], [], []>} : vector<16x8xbf16>, vector<8x32xbf16>, vector<16x32xf32> -> vector<16x32xf32>
    %330 = arith.addf %298, %329 : vector<16x32xf32>
    %331 = vector.extract_strided_slice %267 {offsets = [0, 16], sizes = [16, 8], strides = [1, 1]} : vector<16x96xf32> to vector<16x8xf32>
    %332 = vector.shape_cast %331 : vector<16x8xf32> to vector<2x8x8xf32>
    %333 = arith.truncf %332 : vector<2x8x8xf32> to vector<2x8x8xbf16>
    %334 = vector.extract_strided_slice %267 {offsets = [0, 48], sizes = [16, 8], strides = [1, 1]} : vector<16x96xf32> to vector<16x8xf32>
    %335 = vector.shape_cast %334 : vector<16x8xf32> to vector<2x8x8xf32>
    %336 = arith.truncf %335 : vector<2x8x8xf32> to vector<2x8x8xbf16>
    %337 = vector.extract_strided_slice %267 {offsets = [0, 80], sizes = [16, 8], strides = [1, 1]} : vector<16x96xf32> to vector<16x8xf32>
    %338 = vector.shape_cast %337 : vector<16x8xf32> to vector<2x8x8xf32>
    %339 = arith.truncf %338 : vector<2x8x8xf32> to vector<2x8x8xbf16>
    "tpu.trace_start"() <{level = 10 : i32, message = "bqd,bkd->bqk"}> : () -> ()
    %cst_100 = arith.constant dense<0.000000e+00> : vector<2x8x8xf32>
    %340 = tpu.matmul %333, %336, %cst_100 {dimension_numbers = #tpu.dot_dimension_numbers<[2], [2], [1], [1], [0, 0, 0, 1, 1, 1], [0], [0]>} : vector<2x8x8xbf16>, vector<2x8x8xbf16>, vector<2x8x8xf32> -> vector<2x8x8xf32>
    "tpu.trace_stop"() : () -> ()
    %cst_101 = arith.constant 0.353553385 : f32
    %341 = vector.broadcast %cst_101 : f32 to vector<2x8x8xf32>
    %342 = arith.mulf %340, %341 : vector<2x8x8xf32>
    %343 = vector.broadcast %1 : vector<2x1x8xf32> to vector<2x8x8xf32>
    %344 = arith.addf %342, %343 : vector<2x8x8xf32>
    %cst_102 = arith.constant dense<0xFF800000> : vector<2x8xf32>
    %345 = vector.multi_reduction <maximumf>, %344, %cst_102 [2] : vector<2x8x8xf32> to vector<2x8xf32>
    %346 = vector.shape_cast %345 : vector<2x8xf32> to vector<2x8x1xf32>
    %347 = vector.broadcast %346 : vector<2x8x1xf32> to vector<2x8x8xf32>
    %348 = arith.subf %344, %347 : vector<2x8x8xf32>
    %349 = math.exp %348 : vector<2x8x8xf32>
    %cst_103 = arith.constant dense<0.000000e+00> : vector<2x8xf32>
    %350 = vector.multi_reduction <add>, %349, %cst_103 [2] : vector<2x8x8xf32> to vector<2x8xf32>
    %351 = vector.shape_cast %350 : vector<2x8xf32> to vector<2x8x1xf32>
    %352 = tpu.reciprocal %351 {approx = true} : vector<2x8x1xf32> -> vector<2x8x1xf32>
    %353 = vector.broadcast %352 : vector<2x8x1xf32> to vector<2x8x8xf32>
    %354 = arith.mulf %349, %353 : vector<2x8x8xf32>
    %355 = arith.truncf %354 : vector<2x8x8xf32> to vector<2x8x8xbf16>
    "tpu.trace_start"() <{level = 10 : i32, message = "bqk,bkd->bqd"}> : () -> ()
    %cst_104 = arith.constant dense<0.000000e+00> : vector<2x8x8xf32>
    %356 = tpu.matmul %355, %339, %cst_104 {dimension_numbers = #tpu.dot_dimension_numbers<[2], [1], [1], [2], [0, 0, 0, 1, 1, 2], [0], [0]>} : vector<2x8x8xbf16>, vector<2x8x8xbf16>, vector<2x8x8xf32> -> vector<2x8x8xf32>
    "tpu.trace_stop"() : () -> ()
    %357 = vector.shape_cast %356 : vector<2x8x8xf32> to vector<16x8xf32>
    %358 = arith.truncf %357 : vector<16x8xf32> to vector<16x8xbf16>
    %359 = vector.extract_strided_slice %5 {offsets = [1, 2, 0, 0], sizes = [1, 1, 8, 32], strides = [1, 1, 1, 1]} : vector<2x4x8x32xbf16> to vector<1x1x8x32xbf16>
    %360 = vector.shape_cast %359 : vector<1x1x8x32xbf16> to vector<8x32xbf16>
    %cst_105 = arith.constant dense<0.000000e+00> : vector<16x32xf32>
    %361 = tpu.matmul %358, %360, %cst_105 {dimension_numbers = #tpu.dot_dimension_numbers<[1], [0], [0], [1], [0, 0, 1, 1], [], []>} : vector<16x8xbf16>, vector<8x32xbf16>, vector<16x32xf32> -> vector<16x32xf32>
    %362 = arith.addf %330, %361 : vector<16x32xf32>
    %363 = vector.extract_strided_slice %267 {offsets = [0, 24], sizes = [16, 8], strides = [1, 1]} : vector<16x96xf32> to vector<16x8xf32>
    %364 = vector.shape_cast %363 : vector<16x8xf32> to vector<2x8x8xf32>
    %365 = arith.truncf %364 : vector<2x8x8xf32> to vector<2x8x8xbf16>
    %366 = vector.extract_strided_slice %267 {offsets = [0, 56], sizes = [16, 8], strides = [1, 1]} : vector<16x96xf32> to vector<16x8xf32>
    %367 = vector.shape_cast %366 : vector<16x8xf32> to vector<2x8x8xf32>
    %368 = arith.truncf %367 : vector<2x8x8xf32> to vector<2x8x8xbf16>
    %369 = vector.extract_strided_slice %267 {offsets = [0, 88], sizes = [16, 8], strides = [1, 1]} : vector<16x96xf32> to vector<16x8xf32>
    %370 = vector.shape_cast %369 : vector<16x8xf32> to vector<2x8x8xf32>
    %371 = arith.truncf %370 : vector<2x8x8xf32> to vector<2x8x8xbf16>
    "tpu.trace_start"() <{level = 10 : i32, message = "bqd,bkd->bqk"}> : () -> ()
    %cst_106 = arith.constant dense<0.000000e+00> : vector<2x8x8xf32>
    %372 = tpu.matmul %365, %368, %cst_106 {dimension_numbers = #tpu.dot_dimension_numbers<[2], [2], [1], [1], [0, 0, 0, 1, 1, 1], [0], [0]>} : vector<2x8x8xbf16>, vector<2x8x8xbf16>, vector<2x8x8xf32> -> vector<2x8x8xf32>
    "tpu.trace_stop"() : () -> ()
    %cst_107 = arith.constant 0.353553385 : f32
    %373 = vector.broadcast %cst_107 : f32 to vector<2x8x8xf32>
    %374 = arith.mulf %372, %373 : vector<2x8x8xf32>
    %375 = vector.broadcast %1 : vector<2x1x8xf32> to vector<2x8x8xf32>
    %376 = arith.addf %374, %375 : vector<2x8x8xf32>
    %cst_108 = arith.constant dense<0xFF800000> : vector<2x8xf32>
    %377 = vector.multi_reduction <maximumf>, %376, %cst_108 [2] : vector<2x8x8xf32> to vector<2x8xf32>
    %378 = vector.shape_cast %377 : vector<2x8xf32> to vector<2x8x1xf32>
    %379 = vector.broadcast %378 : vector<2x8x1xf32> to vector<2x8x8xf32>
    %380 = arith.subf %376, %379 : vector<2x8x8xf32>
    %381 = math.exp %380 : vector<2x8x8xf32>
    %cst_109 = arith.constant dense<0.000000e+00> : vector<2x8xf32>
    %382 = vector.multi_reduction <add>, %381, %cst_109 [2] : vector<2x8x8xf32> to vector<2x8xf32>
    %383 = vector.shape_cast %382 : vector<2x8xf32> to vector<2x8x1xf32>
    %384 = tpu.reciprocal %383 {approx = true} : vector<2x8x1xf32> -> vector<2x8x1xf32>
    %385 = vector.broadcast %384 : vector<2x8x1xf32> to vector<2x8x8xf32>
    %386 = arith.mulf %381, %385 : vector<2x8x8xf32>
    %387 = arith.truncf %386 : vector<2x8x8xf32> to vector<2x8x8xbf16>
    "tpu.trace_start"() <{level = 10 : i32, message = "bqk,bkd->bqd"}> : () -> ()
    %cst_110 = arith.constant dense<0.000000e+00> : vector<2x8x8xf32>
    %388 = tpu.matmul %387, %371, %cst_110 {dimension_numbers = #tpu.dot_dimension_numbers<[2], [1], [1], [2], [0, 0, 0, 1, 1, 2], [0], [0]>} : vector<2x8x8xbf16>, vector<2x8x8xbf16>, vector<2x8x8xf32> -> vector<2x8x8xf32>
    "tpu.trace_stop"() : () -> ()
    %389 = vector.shape_cast %388 : vector<2x8x8xf32> to vector<16x8xf32>
    %390 = arith.truncf %389 : vector<16x8xf32> to vector<16x8xbf16>
    %391 = vector.extract_strided_slice %5 {offsets = [1, 3, 0, 0], sizes = [1, 1, 8, 32], strides = [1, 1, 1, 1]} : vector<2x4x8x32xbf16> to vector<1x1x8x32xbf16>
    %392 = vector.shape_cast %391 : vector<1x1x8x32xbf16> to vector<8x32xbf16>
    %cst_111 = arith.constant dense<0.000000e+00> : vector<16x32xf32>
    %393 = tpu.matmul %390, %392, %cst_111 {dimension_numbers = #tpu.dot_dimension_numbers<[1], [0], [0], [1], [0, 0, 1, 1], [], []>} : vector<16x8xbf16>, vector<8x32xbf16>, vector<16x32xf32> -> vector<16x32xf32>
    %394 = arith.addf %362, %393 : vector<16x32xf32>
    %395 = vector.extract_strided_slice %6 {offsets = [1, 0, 0], sizes = [1, 1, 32], strides = [1, 1, 1]} : vector<2x1x32xf32> to vector<1x1x32xf32>
    %396 = vector.shape_cast %395 : vector<1x1x32xf32> to vector<1x32xf32>
    %397 = vector.broadcast %396 : vector<1x32xf32> to vector<16x32xf32>
    %398 = arith.addf %394, %397 : vector<16x32xf32>
    %399 = vector.extract_strided_slice %7 {offsets = [1, 0, 0], sizes = [1, 4, 32], strides = [1, 1, 1]} : vector<2x4x32xf32> to vector<1x4x32xf32>
    %400 = vector.shape_cast %399 : vector<1x4x32xf32> to vector<4x32xf32>
    %401 = arith.addf %259, %398 : vector<16x32xf32>
    %402 = vector.extract_strided_slice %400 {offsets = [0, 0], sizes = [1, 32], strides = [1, 1]} : vector<4x32xf32> to vector<1x32xf32>
    %403 = vector.extract_strided_slice %400 {offsets = [1, 0], sizes = [1, 32], strides = [1, 1]} : vector<4x32xf32> to vector<1x32xf32>
    %cst_112 = arith.constant dense<0.000000e+00> : vector<16xf32>
    %404 = vector.multi_reduction <add>, %401, %cst_112 [1] : vector<16x32xf32> to vector<16xf32>
    %405 = vector.shape_cast %404 : vector<16xf32> to vector<16x1xf32>
    %cst_113 = arith.constant 3.200000e+01 : f32
    %406 = vector.broadcast %cst_113 : f32 to vector<16x1xf32>
    %407 = arith.divf %405, %406 : vector<16x1xf32>
    %408 = vector.broadcast %407 : vector<16x1xf32> to vector<16x32xf32>
    %409 = arith.subf %401, %408 : vector<16x32xf32>
    %410 = arith.mulf %409, %409 : vector<16x32xf32>
    %cst_114 = arith.constant dense<0.000000e+00> : vector<16xf32>
    %411 = vector.multi_reduction <add>, %410, %cst_114 [1] : vector<16x32xf32> to vector<16xf32>
    %412 = vector.shape_cast %411 : vector<16xf32> to vector<16x1xf32>
    %cst_115 = arith.constant 3.200000e+01 : f32
    %413 = vector.broadcast %cst_115 : f32 to vector<16x1xf32>
    %414 = arith.divf %412, %413 : vector<16x1xf32>
    %415 = vector.broadcast %407 : vector<16x1xf32> to vector<16x32xf32>
    %416 = arith.subf %401, %415 : vector<16x32xf32>
    %cst_116 = arith.constant 9.99999974E-6 : f32
    %417 = vector.broadcast %cst_116 : f32 to vector<16x1xf32>
    %418 = arith.addf %414, %417 : vector<16x1xf32>
    %419 = math.rsqrt %418 : vector<16x1xf32>
    %420 = vector.broadcast %419 : vector<16x1xf32> to vector<16x32xf32>
    %421 = arith.mulf %416, %420 : vector<16x32xf32>
    %422 = vector.broadcast %402 : vector<1x32xf32> to vector<16x32xf32>
    %423 = arith.mulf %421, %422 : vector<16x32xf32>
    %424 = vector.broadcast %403 : vector<1x32xf32> to vector<16x32xf32>
    %425 = arith.addf %423, %424 : vector<16x32xf32>
    %426 = arith.truncf %425 : vector<16x32xf32> to vector<16x32xbf16>
    %427 = vector.extract_strided_slice %8 {offsets = [1, 0, 0], sizes = [1, 32, 64], strides = [1, 1, 1]} : vector<2x32x64xbf16> to vector<1x32x64xbf16>
    %428 = vector.shape_cast %427 : vector<1x32x64xbf16> to vector<32x64xbf16>
    %cst_117 = arith.constant dense<0.000000e+00> : vector<16x64xf32>
    %429 = tpu.matmul %426, %428, %cst_117 {dimension_numbers = #tpu.dot_dimension_numbers<[1], [0], [0], [1], [0, 0, 1, 1], [], []>} : vector<16x32xbf16>, vector<32x64xbf16>, vector<16x64xf32> -> vector<16x64xf32>
    %430 = vector.extract_strided_slice %9 {offsets = [1, 0, 0], sizes = [1, 1, 64], strides = [1, 1, 1]} : vector<2x1x64xf32> to vector<1x1x64xf32>
    %431 = vector.shape_cast %430 : vector<1x1x64xf32> to vector<1x64xf32>
    %432 = vector.broadcast %431 : vector<1x64xf32> to vector<16x64xf32>
    %433 = arith.addf %429, %432 : vector<16x64xf32>
    %434 = arith.mulf %433, %433 : vector<16x64xf32>
    %435 = arith.mulf %433, %434 : vector<16x64xf32>
    %cst_118 = arith.constant 4.471500e-02 : f32
    %436 = vector.broadcast %cst_118 : f32 to vector<16x64xf32>
    %437 = arith.mulf %436, %435 : vector<16x64xf32>
    %438 = arith.addf %433, %437 : vector<16x64xf32>
    %cst_119 = arith.constant 0.797884583 : f32
    %439 = vector.broadcast %cst_119 : f32 to vector<16x64xf32>
    %440 = arith.mulf %439, %438 : vector<16x64xf32>
    %441 = math.tanh %440 : vector<16x64xf32>
    %cst_120 = arith.constant 1.000000e+00 : f32
    %442 = vector.broadcast %cst_120 : f32 to vector<16x64xf32>
    %443 = arith.addf %442, %441 : vector<16x64xf32>
    %cst_121 = arith.constant 5.000000e-01 : f32
    %444 = vector.broadcast %cst_121 : f32 to vector<16x64xf32>
    %445 = arith.mulf %444, %443 : vector<16x64xf32>
    %446 = arith.mulf %433, %445 : vector<16x64xf32>
    %447 = arith.truncf %446 : vector<16x64xf32> to vector<16x64xbf16>
    %448 = vector.extract_strided_slice %10 {offsets = [1, 0, 0], sizes = [1, 64, 32], strides = [1, 1, 1]} : vector<2x64x32xbf16> to vector<1x64x32xbf16>
    %449 = vector.shape_cast %448 : vector<1x64x32xbf16> to vector<64x32xbf16>
    %cst_122 = arith.constant dense<0.000000e+00> : vector<16x32xf32>
    %450 = tpu.matmul %447, %449, %cst_122 {dimension_numbers = #tpu.dot_dimension_numbers<[1], [0], [0], [1], [0, 0, 1, 1], [], []>} : vector<16x64xbf16>, vector<64x32xbf16>, vector<16x32xf32> -> vector<16x32xf32>
    %451 = vector.extract_strided_slice %11 {offsets = [1, 0, 0], sizes = [1, 1, 32], strides = [1, 1, 1]} : vector<2x1x32xf32> to vector<1x1x32xf32>
    %452 = vector.shape_cast %451 : vector<1x1x32xf32> to vector<1x32xf32>
    %453 = vector.broadcast %452 : vector<1x32xf32> to vector<16x32xf32>
    %454 = arith.addf %450, %453 : vector<16x32xf32>
    %455 = arith.addf %425, %454 : vector<16x32xf32>
    %456 = vector.extract_strided_slice %400 {offsets = [2, 0], sizes = [1, 32], strides = [1, 1]} : vector<4x32xf32> to vector<1x32xf32>
    %457 = vector.extract_strided_slice %400 {offsets = [3, 0], sizes = [1, 32], strides = [1, 1]} : vector<4x32xf32> to vector<1x32xf32>
    %cst_123 = arith.constant dense<0.000000e+00> : vector<16xf32>
    %458 = vector.multi_reduction <add>, %455, %cst_123 [1] : vector<16x32xf32> to vector<16xf32>
    %459 = vector.shape_cast %458 : vector<16xf32> to vector<16x1xf32>
    %cst_124 = arith.constant 3.200000e+01 : f32
    %460 = vector.broadcast %cst_124 : f32 to vector<16x1xf32>
    %461 = arith.divf %459, %460 : vector<16x1xf32>
    %462 = vector.broadcast %461 : vector<16x1xf32> to vector<16x32xf32>
    %463 = arith.subf %455, %462 : vector<16x32xf32>
    %464 = arith.mulf %463, %463 : vector<16x32xf32>
    %cst_125 = arith.constant dense<0.000000e+00> : vector<16xf32>
    %465 = vector.multi_reduction <add>, %464, %cst_125 [1] : vector<16x32xf32> to vector<16xf32>
    %466 = vector.shape_cast %465 : vector<16xf32> to vector<16x1xf32>
    %cst_126 = arith.constant 3.200000e+01 : f32
    %467 = vector.broadcast %cst_126 : f32 to vector<16x1xf32>
    %468 = arith.divf %466, %467 : vector<16x1xf32>
    %469 = vector.broadcast %461 : vector<16x1xf32> to vector<16x32xf32>
    %470 = arith.subf %455, %469 : vector<16x32xf32>
    %cst_127 = arith.constant 9.99999974E-6 : f32
    %471 = vector.broadcast %cst_127 : f32 to vector<16x1xf32>
    %472 = arith.addf %468, %471 : vector<16x1xf32>
    %473 = math.rsqrt %472 : vector<16x1xf32>
    %474 = vector.broadcast %473 : vector<16x1xf32> to vector<16x32xf32>
    %475 = arith.mulf %470, %474 : vector<16x32xf32>
    %476 = vector.broadcast %456 : vector<1x32xf32> to vector<16x32xf32>
    %477 = arith.mulf %475, %476 : vector<16x32xf32>
    %478 = vector.broadcast %457 : vector<1x32xf32> to vector<16x32xf32>
    %479 = arith.addf %477, %478 : vector<16x32xf32>
    %480 = vector.shape_cast %479 : vector<16x32xf32> to vector<2x8x32xf32>
    %481 = vector.extract_strided_slice %480 {offsets = [0, 0, 0], sizes = [2, 1, 32], strides = [1, 1, 1]} : vector<2x8x32xf32> to vector<2x1x32xf32>
    %482 = vector.shape_cast %481 : vector<2x1x32xf32> to vector<2x32xf32>
    %483 = arith.truncf %482 : vector<2x32xf32> to vector<2x32xbf16>
    %cst_128 = arith.constant dense<0.000000e+00> : vector<2x32xf32>
    %484 = tpu.matmul %483, %12, %cst_128 {dimension_numbers = #tpu.dot_dimension_numbers<[1], [0], [0], [1], [0, 0, 1, 1], [], []>} : vector<2x32xbf16>, vector<32x32xbf16>, vector<2x32xf32> -> vector<2x32xf32>
    %485 = vector.broadcast %13 : vector<1x32xf32> to vector<2x32xf32>
    %486 = arith.addf %484, %485 : vector<2x32xf32>
    %487 = math.tanh %486 : vector<2x32xf32>
    %488 = arith.truncf %487 : vector<2x32xf32> to vector<2x32xbf16>
    %cst_129 = arith.constant dense<0.000000e+00> : vector<2x128xf32>
    %489 = tpu.matmul %488, %14, %cst_129 {dimension_numbers = #tpu.dot_dimension_numbers<[1], [0], [0], [1], [0, 0, 1, 1], [], []>} : vector<2x32xbf16>, vector<32x128xbf16>, vector<2x128xf32> -> vector<2x128xf32>
    %490 = vector.broadcast %15 : vector<1x128xf32> to vector<2x128xf32>
    %491 = arith.addf %489, %490 : vector<2x128xf32>
    %c0_130 = arith.constant 0 : index
    %c0_131 = arith.constant 0 : index
    %492 = vector.load %arg16[%c0_130, %c0_131] : memref<2x128xf32, #tpu.memory_space<vmem>>, vector<2x128xf32>
    tpu.vector_store %arg16[%c0_130, %c0_131], %491 {strides = array<i32>} : memref<2x128xf32, #tpu.memory_space<vmem>>, vector<2x128xf32>,
    return
  }
}

</mosaic_0001>

<bundles_post_ra>
// kernel: bertweet_classifier_forward.1
= control target key start
LH: loop header
LB: loop body
LE: loop exit
PB: predicated region body
PF: predicated region fallthrough
CT: control target
= control target key end

     0   :  { %s4533_s0 = inlined_call_operand.vmem [shape: f32[16,32], index: 0, kind: input, shape index: {}]   ;;  %s4534_s1 = inlined_call_operand.vmem [shape: f32[2,1,8], index: 1, kind: input, shape index: {}]   ;;  %s4535_s2 = inlined_call_operand.vmem [shape: f32[2,32], index: 2, kind: input, shape index: {}]   ;;  %s4536_s3 = inlined_call_operand.vmem [shape: bf16[2,32,96], index: 3, kind: input, shape index: {}]   ;;  %s4537_s4 = inlined_call_operand.vmem [shape: f32[2,1,96], index: 4, kind: input, shape index: {}]   ;;  %s4538_s5 = inlined_call_operand.vmem [shape: bf16[2,4,8,32], index: 5, kind: input, shape index: {}]   ;;  %s4539_s6 = inlined_call_operand.vmem [shape: f32[2,1,32], index: 6, kind: input, shape index: {}]   ;;  %s4540_s7 = inlined_call_operand.vmem [shape: f32[2,4,32], index: 7, kind: input, shape index: {}]   ;;  %s4541_s8 = inlined_call_operand.vmem [shape: bf16[2,32,64], index: 8, kind: input, shape index: {}]   ;;  %s4542_s9 = inlined_call_operand.vmem [shape: f32[2,1,64], index: 9, kind: input, shape index: {}]   ;;  %s4543_s10 = inlined_call_operand.vmem [shape: bf16[2,64,32], index: 10, kind: input, shape index: {}]   ;;  %s4544_s11 = inlined_call_operand.vmem [shape: f32[2,1,32], index: 11, kind: input, shape index: {}]   ;;  %s4545_s12 = inlined_call_operand.vmem [shape: bf16[32,32], index: 12, kind: input, shape index: {}]   ;;  %s4546_s13 = inlined_call_operand.vmem [shape: f32[1,32], index: 13, kind: input, shape index: {}]   ;;  %s4547_s14 = inlined_call_operand.vmem [shape: bf16[32,128], index: 14, kind: input, shape index: {}]   ;;  %s4548_s15 = inlined_call_operand.vmem [shape: f32[1,128], index: 15, kind: input, shape index: {}]   ;;  %s4549_s16 = inlined_call_operand.hbm [shape: f32[2,128], index: 16, kind: output, shape index: {}]  }
   0x1   :  { %4555 = sst [smem:[#allocation5_spill]] %s4533_s0 }
   0x2   :  { %s4556_s23 = sld [smem:[#allocation5_spill]]  ;;  %vm120_vm0 = vcmask 261120  }
   0x8   :  { %v55_v0 = vld [vmem:[%s4556_s23] sm:$0xff]  ;;  %v56_v1 = vld [vmem:[%s4556_s23 + $0x8] sm:$0xff] }
   0x9   :  { %v121_v2 = vsel %vm120_vm0, %v55_v0, 0.0  ;;  %v124_v3 = vsel %vm120_vm0, %v56_v1, 0.0 }
   0xa   :  { %122 = vadd.xlane.f32.xlu0 %v121_v2 }
   0xe   :  { %125 = vadd.xlane.f32.xlu0 %v124_v3 }
   0xf   :  { %21 = vsyncpa [#allocation3], 0  ;;  %v3636_v14 = vld [vmem:[%s4536_s3] sm:$0xff]   ;;  %v3776_v15 = vmov 0.0   ;;  %v3637_v16 = vld [vmem:[%s4536_s3 + $0x8] sm:$0xff]   ;;  %vm3777_vm1 = vmmov 0   ;;  %v148_v21 = vlaneseq }
  0x10   :  { %3310 = vmatprep.subr.bf16.mxu0 %v3776_v15  ;;  %3318 = vmatprep.subr.bf16.mxu1 %v3776_v15  ;;  %v59_v26 = vld [vmem:[%s4535_s2] sm:$0x3]  ;;  %s3778_s18 = smov 96   ;;  %vm228_vm2 = vcmask 64512   ;;  %s3779_s23 = smov 64   ;;  %vm369_vm3 = vcmask 1043456  }
  0x11   :  { %3311 = vmatpush3.bf16.msra.mxu0 %v3636_v14  ;;  %3314 = vmatprep.mubr.msk.bf16.mxu0 %vm3777_vm1, %v3776_v15  ;;  %v3899_v24 = vshrl.u32 %v148_v21, 7  ;;  %v3122_v39 = vld [vmem:[%s4537_s4] ss:$0 sm:$0xff]  ;;  %v3952_v58 = vld [vmem:[%s4534_s1 + $0x1] ss:$0 sm:$0xff]  ;;  %s3780_s24 = smov 88  }
  0x12   :  { %3312 = vmatprep.subr.bf16.mxu0 %v3776_v15  ;;  %3320 = vmatprep.mubr.msk.bf16.mxu1 %vm3777_vm1, %v3776_v15  ;;  %v3947_v53 = vld [vmem:[%s4534_s1] ss:$0 sm:$0xff]  ;;  %s3781_s25 = smov 120   ;;  %s3782_s26 = smov 56   ;;  %vm1489_vm4 = vcmask 523264   ;;  %vm2986_vm5 = vcmask 1041409  }
  0x13   :  { %v3902_v25 = vsub.s32 0, %v3899_v24  ;;  %v3909_v30 = vsub.s32 1, %v3899_v24  ;;  %s3783_s27 = smov 80   ;;  %s3784_s28 = smov 112  }
  0x14   :  { %s3785_s17 = smov 48   ;;  %s3786_s19 = smov 72  }
  0x15   :  { %3313 = vmatpush3.bf16.msra.mxu0 %v3637_v16  ;;  %v151_v29 = vrot.slane %v59_v26, %v3902_v25  ;;  %v157_v34 = vrot.slane %v59_v26, %v3909_v30  ;;  %s4553_s20 = smov 104   ;;  %s4551_s29 = smov 40  }
  0x16   :  { %3324 = vmatprep.subr.bf16.mxu0 %v3776_v15 }
  0x97   :  { %v123_v4 = vpop.xlane.xlu0 %122 }
  0x98   :  { %v128_v5 = vmul.f32 0.03125, %v123_v4 }
  0x9a   :  { %v130_v6 = vsub.f32 %v55_v0, %v128_v5 }
  0x9b   :  { %v126_v7 = vpop.xlane.xlu0 %125 }
  0x9c   :  { %v129_v8 = vmul.f32 0.03125, %v126_v7  ;;  %v132_v9 = vmul.f32 %v130_v6, %v130_v6 }
  0x9e   :  { %v131_v10 = vsub.f32 %v56_v1, %v129_v8  ;;  %v134_v11 = vsel %vm120_vm0, %v132_v9, 0.0 }
  0x9f   :  { %135 = vadd.xlane.f32.xlu1 %v134_v11 }
  0xa0   :  { %v133_v12 = vmul.f32 %v131_v10, %v131_v10 }
  0xa2   :  { %v137_v13 = vsel %vm120_vm0, %v133_v12, 0.0 }
  0xa3   :  { %138 = vadd.xlane.f32.xlu1 %v137_v13 }
 0x12c   :  { %v136_v17 = vpop.xlane.xlu1 %135 }
 0x12d   :  { %v140_v18 = vmul.f32 0.03125, %v136_v17 }
 0x12f   :  { %v142_v19 = vadd.f32 1e-05, %v140_v18 }
 0x130   :  { %v139_v20 = vpop.xlane.xlu1 %138 }
 0x131   :  { %3656 = vrsqrt.f32 %v142_v19  ;;  %v141_v22 = vmul.f32 0.03125, %v139_v20 }
 0x133   :  { %v143_v23 = vadd.f32 1e-05, %v141_v22 }
 0x135   :  { %3658 = vrsqrt.f32 %v143_v23 }
 0x13b   :  { %v3657_v27 = vpop.eup %3656 }
 0x13c   :  { %v146_v28 = vmul.f32 %v3657_v27, %v130_v6 }
 0x13e   :  { %v152_v33 = vmul.f32 %v151_v29, %v146_v28 }
 0x13f   :  { %v3659_v31 = vpop.eup %3658 }
 0x140   :  { %v147_v32 = vmul.f32 %v3659_v31, %v131_v10  ;;  %v3912_v36 = vadd.f32 %v157_v34, %v152_v33 }
 0x142   :  { %v153_v35 = vmul.f32 %v151_v29, %v147_v32 }
 0x144   :  { %v3914_v37 = vadd.f32 %v157_v34, %v153_v35 }
 0x146   :  { %v160_v38 = vpack.c.bf16 %v3914_v37, %v3912_v36 }
 0x148   :  { %3315 = vmatmul.mubr.msk.bf16.vlgmr.msra.gmra.mrb[0].mxu0 %vm120_vm0, %v160_v38 }
 0x149   :  { %3326 = vmatprep.mubr.msk.bf16.mxu0 %vm3777_vm1, %v3776_v15 }
 0x21b   :  { %v216_v40 = vpop.f32.mrb[0].mxu0 }
 0x21c   :  { %v217_v41 = vadd.f32 %v3122_v39, %v216_v40  ;;  %v3316_v42 = vpop.f32.mrb[1].mxu0 }
 0x21d   :  { %v219_v43 = vpop.f32.mrb[2].mxu0 }
 0x21e   :  { %v3924_v44 = vpack.c.bf16 %v217_v41, %v217_v41  ;;  %v220_v45 = vadd.f32 %v3122_v39, %v219_v43  ;;  %v3317_v46 = vpop.f32.mrb[3].mxu0 }
 0x220   :  { %v3926_v47 = vpack.c.bf16 %v220_v45, %v220_v45  ;;  %226 = vrot.lane.b32.xlu0 %v3924_v44, %s3778_s18 }
 0x222   :  { %276 = vrot.lane.b32.xlu1 %v3926_v47, %s3778_s18 }
 0x292   :  { %v227_v48 = vpop.permute.xlu0 %226 }
 0x293   :  { %v233_v49 = vsel %vm228_vm2, %v227_v48, 0 }
 0x294   :  { %3319 = vmatpush3.bf16.xpose.msra.mxu1 %v233_v49  ;;  %v277_v50 = vpop.permute.xlu1 %276 }
 0x295   :  { %v282_v51 = vsel %vm228_vm2, %v277_v50, 0  ;;  %3330 = vmatprep.subr.bf16.mxu1 %v3776_v15 }
 0x296   :  { %3325 = vmatpush3.bf16.xpose.msra.mxu0 %v282_v51 }
 0x297   :  { %3336 = vmatprep.subr.bf16.mxu0 %v3776_v15 }
 0x29b   :  { %3321 = vmatmul.mubr.msk.bf16.vlgmr.msra.gmra.mrb[0].mxu1 %vm228_vm2, %v3924_v44 }
 0x29c   :  { %3332 = vmatprep.mubr.msk.bf16.mxu1 %vm3777_vm1, %v3776_v15 }
 0x29d   :  { %3327 = vmatmul.mubr.msk.bf16.vlgmr.msra.gmra.mrb[4].mxu0 %vm228_vm2, %v3926_v47 }
 0x29e   :  { %3338 = vmatprep.mubr.msk.bf16.mxu0 %vm3777_vm1, %v3776_v15 }
 0x36e   :  { %v269_v52 = vpop.f32.mrb[0].mxu1 }
 0x36f   :  { %v324_v54 = vmul.f32 0.35355338, %v269_v52  ;;  %v3322_v55 = vpop.f32.mrb[1].mxu1 }
 0x370   :  { %v272_v56 = vpop.f32.mrb[2].mxu1  ;;  %v318_v57 = vpop.f32.mrb[4].mxu0 }
 0x371   :  { %v325_v59 = vmul.f32 0.35355338, %v318_v57  ;;  %v3323_v60 = vpop.f32.mrb[3].mxu1  ;;  %v3328_v61 = vpop.f32.mrb[5].mxu0  ;;  %v338_v62 = vadd.f32 %v3947_v53, %v324_v54 }
 0x372   :  { %v321_v63 = vpop.f32.mrb[6].mxu0 }
 0x373   :  { %v3329_v0 = vpop.f32.mrb[7].mxu0  ;;  %v340_v1 = vsel %vm228_vm2, %v338_v62, -inf  ;;  %v339_v2 = vadd.f32 %v3952_v58, %v325_v59 }
 0x374   :  { %341 = vmax.xlane.f32.xlu1 %v340_v1 }
 0x375   :  { %v343_v3 = vsel %vm228_vm2, %v339_v2, -inf }
 0x376   :  { %344 = vmax.xlane.f32.xlu0 %v343_v3 }
 0x385   :  { %413 = vrot.lane.b32.xlu1 %v3926_v47, %s3779_s23 }
 0x389   :  { %464 = vrot.lane.b32.xlu1 %v3924_v44, %s3780_s24 }
 0x401   :  { %v342_v4 = vpop.xlane.xlu1 %341 }
 0x402   :  { %v346_v5 = vsub.f32 %v338_v62, %v342_v4 }
 0x403   :  { %v345_v6 = vpop.xlane.xlu0 %344 }
 0x404   :  { %v348_v7 = vmul.f32 1.442695, %v346_v5  ;;  %v347_v8 = vsub.f32 %v339_v2, %v345_v6 }
 0x405   :  { %v414_v9 = vpop.permute.xlu1 %413 }
 0x406   :  { %3660 = vpow2.f32 %v348_v7  ;;  %v350_v10 = vmul.f32 1.442695, %v347_v8  ;;  %v419_v11 = vsel %vm369_vm3, %v414_v9, 0 }
 0x407   :  { %3337 = vmatpush3.bf16.msra.mxu0 %v419_v11 }
 0x408   :  { %3662 = vpow2.f32 %v350_v10  ;;  %3348 = vmatprep.subr.bf16.mxu0 %v3776_v15 }
 0x409   :  { %v465_v17 = vpop.permute.xlu1 %464 }
 0x40a   :  { %v470_v31 = vsel %vm228_vm2, %v465_v17, 0 }
 0x410   :  { %v3661_v12 = vpop.eup %3660 }
 0x411   :  { %v352_v13 = vsel %vm228_vm2, %v3661_v12, 0.0 }
 0x412   :  { %v3663_v14 = vpop.eup %3662  ;;  %353 = vadd.xlane.f32.xlu0 %v352_v13 }
 0x413   :  { %v355_v16 = vsel %vm228_vm2, %v3663_v14, 0.0 }
 0x414   :  { %356 = vadd.xlane.f32.xlu1 %v355_v16 }
 0x425   :  { %514 = vrot.lane.b32.xlu1 %v3926_v47, %s3780_s24 }
 0x428   :  { %364 = vrot.lane.b32.xlu0 %v3924_v44, %s3779_s23 }
 0x429   :  { %512 = vrot.lane.b32.xlu1 %v3926_v47, %s3781_s25 }
 0x42c   :  { %462 = vrot.lane.b32.xlu0 %v3924_v44, %s3781_s25 }
 0x49f   :  { %v354_v18 = vpop.xlane.xlu0 %353 }
 0x4a0   :  { %3664 = vrcp.f32 %v354_v18 }
 0x4a1   :  { %v357_v19 = vpop.xlane.xlu1 %356 }
 0x4a2   :  { %3666 = vrcp.f32 %v357_v19  ;;  %v71_v19 = vld [vmem:[%s4538_s5 + $0x4] sm:$0xf] }
 0x4a3   :  { %v365_v20 = vpop.permute.xlu0 %364 }
 0x4a4   :  { %v371_v21 = vsel %vm369_vm3, %v365_v20, 0 }
 0x4a5   :  { %3331 = vmatpush3.bf16.msra.mxu1 %v371_v21  ;;  %v515_v29 = vpop.permute.xlu1 %514 }
 0x4a6   :  { %3342 = vmatprep.subr.bf16.mxu1 %v3776_v15  ;;  %v520_v33 = vsel %vm228_vm2, %v515_v29, 0 }
 0x4a7   :  { %v463_v34 = vpop.permute.xlu0 %462 }
 0x4a9   :  { %v513_v35 = vpop.permute.xlu1 %512 }
 0x4aa   :  { %v3665_v22 = vpop.eup %3664 }
 0x4ab   :  { %v360_v23 = vmul.f32 %v3665_v22, %v3661_v12  ;;  %v691_v22 = vsel %vm369_vm3, %v71_v19, 0 }
 0x4ac   :  { %v3667_v26 = vpop.eup %3666 }
 0x4ad   :  { %v361_v27 = vmul.f32 %v3667_v26, %v3663_v14  ;;  %v362_v28 = vpack.c.bf16 %v360_v23, %v360_v23  ;;  %v70_v26 = vld [vmem:[%s4538_s5] sm:$0xf] }
 0x4ae   :  { %v738_v29 = vsel %vm369_vm3, %v70_v26, 0 }
 0x4af   :  { %3333 = vmatmul.mubr.msk.bf16.vlgmr.msra.gmra.mrb[4].mxu1 %vm228_vm2, %v362_v28  ;;  %v363_v32 = vpack.c.bf16 %v361_v27, %v361_v27 }
 0x4b0   :  { %3343 = vmatpush3.bf16.xpose.msra.mxu1 %v470_v31  ;;  %3344 = vmatprep.mubr.msk.bf16.mxu1 %vm3777_vm1, %v3776_v15 }
 0x4b1   :  { %3339 = vmatmul.mubr.msk.bf16.vlgmr.msra.gmra.mrb[8].mxu0 %vm228_vm2, %v363_v32  ;;  %3354 = vmatprep.subr.bf16.mxu1 %v3776_v15 }
 0x4b2   :  { %3349 = vmatpush3.bf16.xpose.msra.mxu0 %v520_v33  ;;  %3350 = vmatprep.mubr.msk.bf16.mxu0 %vm3777_vm1, %v3776_v15 }
 0x4b3   :  { %3360 = vmatprep.subr.bf16.mxu0 %v3776_v15 }
 0x4b7   :  { %3345 = vmatmul.mubr.msk.bf16.vlgmr.msra.gmra.mrb[8].mxu1 %vm228_vm2, %v463_v34 }
 0x4b8   :  { %3356 = vmatprep.mubr.msk.bf16.mxu1 %vm3777_vm1, %v3776_v15 }
 0x4b9   :  { %3351 = vmatmul.mubr.msk.bf16.vlgmr.msra.gmra.mrb[12].mxu0 %vm228_vm2, %v513_v35 }
 0x4ba   :  { %3362 = vmatprep.mubr.msk.bf16.mxu0 %vm3777_vm1, %v3776_v15 }
 0x582   :  { %v3992_v38 = vpop.f32.mrb[4].mxu1 }
 0x583   :  { %v3334_v39 = vpop.f32.mrb[5].mxu1 }
 0x584   :  { %v410_v40 = vpop.f32.mrb[6].mxu1  ;;  %v3994_v41 = vpop.f32.mrb[8].mxu0 }
 0x585   :  { %v461_v42 = vpack.c.bf16 %v3994_v41, %v3992_v38  ;;  %v3335_v43 = vpop.f32.mrb[7].mxu1  ;;  %v3340_v45 = vpop.f32.mrb[9].mxu0 }
 0x586   :  { %v458_v46 = vpop.f32.mrb[10].mxu0 }
 0x587   :  { %v3341_v48 = vpop.f32.mrb[11].mxu0 }
 0x58a   :  { %v506_v49 = vpop.f32.mrb[8].mxu1 }
 0x58b   :  { %v562_v50 = vmul.f32 0.35355338, %v506_v49  ;;  %v3346_v51 = vpop.f32.mrb[9].mxu1 }
 0x58c   :  { %v509_v52 = vpop.f32.mrb[10].mxu1  ;;  %v556_v54 = vpop.f32.mrb[12].mxu0 }
 0x58d   :  { %v563_v55 = vmul.f32 0.35355338, %v556_v54  ;;  %v3347_v56 = vpop.f32.mrb[11].mxu1  ;;  %v3352_v57 = vpop.f32.mrb[13].mxu0  ;;  %v564_v59 = vadd.f32 %v3947_v53, %v562_v50 }
 0x58e   :  { %v559_v60 = vpop.f32.mrb[14].mxu0 }
 0x58f   :  { %v3353_v61 = vpop.f32.mrb[15].mxu0  ;;  %v566_v62 = vsel %vm228_vm2, %v564_v59, -inf  ;;  %v565_v63 = vadd.f32 %v3952_v58, %v563_v55 }
 0x590   :  { %567 = vmax.xlane.f32.xlu0 %v566_v62 }
 0x591   :  { %v569_v0 = vsel %vm228_vm2, %v565_v63, -inf }
 0x592   :  { %570 = vmax.xlane.f32.xlu1 %v569_v0 }
 0x5a3   :  { %638 = vrot.lane.b32.xlu1 %v3926_v47, %s3782_s26 }
 0x5a7   :  { %783 = vrot.lane.b32.xlu1 %v3924_v44, %s3783_s27 }
 0x5ab   :  { %833 = vrot.lane.b32.xlu1 %v3926_v47, %s3783_s27 }
 0x5af   :  { %831 = vrot.lane.b32.xlu1 %v3926_v47, %s3784_s28 }
 0x61d   :  { %v568_v1 = vpop.xlane.xlu0 %567 }
 0x61e   :  { %v572_v2 = vsub.f32 %v564_v59, %v568_v1 }
 0x61f   :  { %v571_v3 = vpop.xlane.xlu1 %570 }
 0x620   :  { %v574_v4 = vmul.f32 1.442695, %v572_v2  ;;  %v573_v5 = vsub.f32 %v565_v63, %v571_v3 }
 0x622   :  { %3668 = vpow2.f32 %v574_v4  ;;  %v576_v6 = vmul.f32 1.442695, %v573_v5 }
 0x623   :  { %v639_v7 = vpop.permute.xlu1 %638 }
 0x624   :  { %3670 = vpow2.f32 %v576_v6  ;;  %v644_v8 = vsel %vm369_vm3, %v639_v7, 0 }
 0x625   :  { %3361 = vmatpush3.bf16.msra.mxu0 %v644_v8 }
 0x626   :  { %3372 = vmatprep.subr.bf16.mxu0 %v3776_v15 }
 0x627   :  { %v784_v31 = vpop.permute.xlu1 %783 }
 0x628   :  { %v789_v46 = vsel %vm228_vm2, %v784_v31, 0 }
 0x62b   :  { %v834_v32 = vpop.permute.xlu1 %833 }
 0x62c   :  { %v3669_v9 = vpop.eup %3668  ;;  %v839_v33 = vsel %vm228_vm2, %v834_v32, 0 }
 0x62d   :  { %v578_v10 = vsel %vm228_vm2, %v3669_v9, 0.0 }
 0x62e   :  { %v3671_v11 = vpop.eup %3670  ;;  %579 = vadd.xlane.f32.xlu0 %v578_v10 }
 0x62f   :  { %v581_v12 = vsel %vm228_vm2, %v3671_v11, 0.0  ;;  %v832_v34 = vpop.permute.xlu1 %831 }
 0x632   :  { %582 = vadd.xlane.f32.xlu0 %v581_v12 }
 0x648   :  { %590 = vrot.lane.b32.xlu0 %v3924_v44, %s3782_s26 }
 0x64c   :  { %781 = vrot.lane.b32.xlu0 %v3924_v44, %s3784_s28 }
 0x6bb   :  { %v580_v13 = vpop.xlane.xlu0 %579 }
 0x6bc   :  { %3672 = vrcp.f32 %v580_v13 }
 0x6bf   :  { %v583_v14 = vpop.xlane.xlu0 %582 }
 0x6c0   :  { %3674 = vrcp.f32 %v583_v14 }
 0x6c3   :  { %v591_v16 = vpop.permute.xlu0 %590 }
 0x6c4   :  { %v596_v17 = vsel %vm369_vm3, %v591_v16, 0 }
 0x6c5   :  { %3355 = vmatpush3.bf16.msra.mxu1 %v596_v17 }
 0x6c6   :  { %v3673_v18 = vpop.eup %3672  ;;  %3366 = vmatprep.subr.bf16.mxu1 %v3776_v15 }
 0x6c7   :  { %v586_v20 = vmul.f32 %v3673_v18, %v3669_v9  ;;  %v782_v51 = vpop.permute.xlu0 %781 }
 0x6c9   :  { %v588_v21 = vpack.c.bf16 %v586_v20, %v586_v20 }
 0x6ca   :  { %v3675_v23 = vpop.eup %3674 }
 0x6cb   :  { %v587_v27 = vmul.f32 %v3675_v23, %v3671_v11  ;;  %3357 = vmatmul.mubr.msk.bf16.vlgmr.msra.gmra.mrb[12].mxu1 %vm228_vm2, %v588_v21 }
 0x6cc   :  { %3367 = vmatpush3.bf16.msra.mxu1 %v691_v22  ;;  %3368 = vmatprep.mubr.msk.bf16.mxu1 %vm3777_vm1, %v3776_v15 }
 0x6cd   :  { %v589_v28 = vpack.c.bf16 %v587_v27, %v587_v27  ;;  %3378 = vmatprep.subr.bf16.mxu1 %v3776_v15 }
 0x6cf   :  { %3363 = vmatmul.mubr.msk.bf16.vlgmr.msra.gmra.mrb[16].mxu0 %vm228_vm2, %v589_v28 }
 0x6d0   :  { %3373 = vmatpush3.bf16.msra.mxu0 %v738_v29  ;;  %3374 = vmatprep.mubr.msk.bf16.mxu0 %vm3777_vm1, %v3776_v15 }
 0x6d1   :  { %3384 = vmatprep.subr.bf16.mxu0 %v3776_v15 }
 0x6d7   :  { %3375 = vmatmul.mubr.msk.bf16.vlgmr.msra.gmra.mrb[20].mxu0 %vm228_vm2, %v461_v42 }
 0x6d8   :  { %3386 = vmatprep.mubr.msk.bf16.mxu0 %vm3777_vm1, %v3776_v15 }
 0x6d9   :  { %3385 = vmatpush3.bf16.xpose.msra.mxu0 %v839_v33 }
 0x6da   :  { %3396 = vmatprep.subr.bf16.mxu0 %v3776_v15 }
 0x6e0   :  { %3387 = vmatmul.mubr.msk.bf16.vlgmr.msra.gmra.mrb[24].mxu0 %vm228_vm2, %v832_v34 }
 0x6e1   :  { %3398 = vmatprep.mubr.msk.bf16.mxu0 %vm3777_vm1, %v3776_v15 }
 0x79e   :  { %v632_v35 = vpop.f32.mrb[12].mxu1 }
 0x79f   :  { %v3358_v39 = vpop.f32.mrb[13].mxu1 }
 0x7a0   :  { %v635_v40 = vpop.f32.mrb[14].mxu1 }
 0x7a1   :  { %v3359_v38 = vpop.f32.mrb[15].mxu1 }
 0x7a2   :  { %v680_v41 = vpop.f32.mrb[16].mxu0 }
 0x7a3   :  { %v686_v42 = vpack.c.bf16 %v680_v41, %v632_v35  ;;  %v3364_v43 = vpop.f32.mrb[17].mxu0 }
 0x7a4   :  { %v683_v45 = vpop.f32.mrb[18].mxu0 }
 0x7a5   :  { %v3365_v48 = vpop.f32.mrb[19].mxu0  ;;  %3369 = vmatmul.mubr.msk.bf16.vlgmr.msra.gmra.mrb[16].mxu1 %vm228_vm2, %v686_v42 }
 0x7a6   :  { %3379 = vmatpush3.bf16.xpose.msra.mxu1 %v789_v46  ;;  %3380 = vmatprep.mubr.msk.bf16.mxu1 %vm3777_vm1, %v3776_v15 }
 0x7a7   :  { %3390 = vmatprep.subr.bf16.mxu1 %v3776_v15 }
 0x7aa   :  { %v774_v49 = vpop.f32.mrb[20].mxu0 }
 0x7ab   :  { %v3376_v50 = vpop.f32.mrb[21].mxu0 }
 0x7ac   :  { %v777_v52 = vpop.f32.mrb[22].mxu0 }
 0x7ad   :  { %v3377_v54 = vpop.f32.mrb[23].mxu0  ;;  %3381 = vmatmul.mubr.msk.bf16.vlgmr.msra.gmra.mrb[20].mxu1 %vm228_vm2, %v782_v51 }
 0x7ae   :  { %3392 = vmatprep.mubr.msk.bf16.mxu1 %vm3777_vm1, %v3776_v15 }
 0x7b3   :  { %v875_v55 = vpop.f32.mrb[24].mxu0 }
 0x7b4   :  { %v882_v56 = vmul.f32 0.35355338, %v875_v55  ;;  %v3388_v57 = vpop.f32.mrb[25].mxu0 }
 0x7b5   :  { %v878_v59 = vpop.f32.mrb[26].mxu0 }
 0x7b6   :  { %v3389_v60 = vpop.f32.mrb[27].mxu0  ;;  %v884_v61 = vadd.f32 %v3952_v58, %v882_v56 }
 0x7b8   :  { %v888_v62 = vsel %vm228_vm2, %v884_v61, -inf }
 0x7b9   :  { %889 = vmax.xlane.f32.xlu1 %v888_v62 }
 0x7ca   :  { %957 = vrot.lane.b32.xlu1 %v3926_v47, %s3785_s17 }
 0x7ce   :  { %1057 = vrot.lane.b32.xlu1 %v3924_v44, %s3786_s19 }
 0x7d2   :  { %1107 = vrot.lane.b32.xlu1 %v3926_v47, %s3786_s19 }
 0x7d6   :  { %1105 = vrot.lane.b32.xlu1 %v3926_v47, %s4553_s20 }
 0x846   :  { %v890_v63 = vpop.xlane.xlu1 %889 }
 0x847   :  { %v892_v2 = vsub.f32 %v884_v61, %v890_v63 }
 0x849   :  { %v895_v3 = vmul.f32 1.442695, %v892_v2 }
 0x84a   :  { %v958_v0 = vpop.permute.xlu1 %957 }
 0x84b   :  { %v963_v1 = vsel %vm369_vm3, %v958_v0, 0  ;;  %3676 = vpow2.f32 %v895_v3 }
 0x84c   :  { %3397 = vmatpush3.bf16.msra.mxu0 %v963_v1 }
 0x84d   :  { %3408 = vmatprep.subr.bf16.mxu0 %v3776_v15 }
 0x84e   :  { %v1058_v31 = vpop.permute.xlu1 %1057 }
 0x84f   :  { %v1063_v33 = vsel %vm228_vm2, %v1058_v31, 0 }
 0x852   :  { %v1108_v60 = vpop.permute.xlu1 %1107 }
 0x853   :  { %v1113_v1 = vsel %vm228_vm2, %v1108_v60, 0 }
 0x855   :  { %v3677_v18 = vpop.eup %3676 }
 0x856   :  { %v900_v19 = vsel %vm228_vm2, %v3677_v18, 0.0 }
 0x878   :  { %v727_v4 = vpop.f32.mrb[16].mxu1 }
 0x879   :  { %v4067_v5 = vadd.f32 %v774_v49, %v727_v4  ;;  %v3370_v6 = vpop.f32.mrb[17].mxu1  ;;  %v72_v49 = vld [vmem:[%s4538_s5 + $0x8] sm:$0xf] }
 0x87a   :  { %v730_v7 = vpop.f32.mrb[18].mxu1  ;;  %v1010_v50 = vsel %vm369_vm3, %v72_v49, 0 }
 0x87b   :  { %v4069_v8 = vadd.f32 %v777_v52, %v730_v7  ;;  %v3371_v9 = vpop.f32.mrb[19].mxu1 }
 0x880   :  { %v825_v10 = vpop.f32.mrb[20].mxu1 }
 0x881   :  { %v881_v11 = vmul.f32 0.35355338, %v825_v10  ;;  %v3382_v12 = vpop.f32.mrb[21].mxu1 }
 0x882   :  { %v828_v13 = vpop.f32.mrb[22].mxu1 }
 0x883   :  { %v3383_v14 = vpop.f32.mrb[23].mxu1  ;;  %v883_v16 = vadd.f32 %v3947_v53, %v881_v11 }
 0x885   :  { %v885_v17 = vsel %vm228_vm2, %v883_v16, -inf }
 0x886   :  { %886 = vmax.xlane.f32.xlu0 %v885_v17 }
 0x88a   :  { %901 = vadd.xlane.f32.xlu0 %v900_v19 }
 0x913   :  { %v887_v20 = vpop.xlane.xlu0 %886 }
 0x914   :  { %v891_v21 = vsub.f32 %v883_v16, %v887_v20 }
 0x916   :  { %v893_v22 = vmul.f32 1.442695, %v891_v21 }
 0x917   :  { %v902_v23 = vpop.xlane.xlu0 %901 }
 0x918   :  { %3678 = vpow2.f32 %v893_v22 }
 0x919   :  { %3680 = vrcp.f32 %v902_v23 }
 0x922   :  { %v3679_v26 = vpop.eup %3678 }
 0x923   :  { %v3681_v27 = vpop.eup %3680  ;;  %v897_v28 = vsel %vm228_vm2, %v3679_v26, 0.0 }
 0x924   :  { %v906_v29 = vmul.f32 %v3681_v27, %v3677_v18  ;;  %898 = vadd.xlane.f32.xlu0 %v897_v28 }
 0x926   :  { %v908_v32 = vpack.c.bf16 %v906_v29, %v906_v29 }
 0x928   :  { %3399 = vmatmul.mubr.msk.bf16.vlgmr.msra.gmra.mrb[28].mxu0 %vm228_vm2, %v908_v32 }
 0x929   :  { %3409 = vmatpush3.bf16.xpose.msra.mxu0 %v1063_v33  ;;  %3410 = vmatprep.mubr.msk.bf16.mxu0 %vm3777_vm1, %v3776_v15 }
 0x92a   :  { %3420 = vmatprep.subr.bf16.mxu0 %v3776_v15 }
 0x93a   :  { %909 = vrot.lane.b32.xlu0 %v3924_v44, %s3785_s17 }
 0x93e   :  { %1055 = vrot.lane.b32.xlu0 %v3924_v44, %s4553_s20 }
 0x9b1   :  { %v899_v34 = vpop.xlane.xlu0 %898 }
 0x9b2   :  { %3682 = vrcp.f32 %v899_v34 }
 0x9b5   :  { %v910_v35 = vpop.permute.xlu0 %909 }
 0x9b6   :  { %v915_v39 = vsel %vm369_vm3, %v910_v35, 0 }
 0x9b7   :  { %3391 = vmatpush3.bf16.msra.mxu1 %v915_v39 }
 0x9b8   :  { %3402 = vmatprep.subr.bf16.mxu1 %v3776_v15 }
 0x9b9   :  { %v1056_v40 = vpop.permute.xlu0 %1055 }
 0x9ba   :  { %3411 = vmatmul.mubr.msk.bf16.vlgmr.msra.gmra.mrb[32].mxu0 %vm228_vm2, %v1056_v40 }
 0x9bb   :  { %3422 = vmatprep.mubr.msk.bf16.mxu0 %vm3777_vm1, %v3776_v15 }
 0x9bc   :  { %v3683_v38 = vpop.eup %3682 }
 0x9bd   :  { %v905_v41 = vmul.f32 %v3683_v38, %v3679_v26 }
 0x9bf   :  { %v907_v42 = vpack.c.bf16 %v905_v41, %v905_v41  ;;  %v73_v41 = vld [vmem:[%s4538_s5 + $0xc] sm:$0xf] }
 0x9c1   :  { %3393 = vmatmul.mubr.msk.bf16.vlgmr.msra.gmra.mrb[24].mxu1 %vm228_vm2, %v907_v42  ;;  %v1284_v42 = vsel %vm369_vm3, %v73_v41, 0 }
 0x9c2   :  { %3404 = vmatprep.mubr.msk.bf16.mxu1 %vm3777_vm1, %v3776_v15  ;;  %3403 = vmatpush3.bf16.msra.mxu1 %v1010_v50 }
 0x9c3   :  { %3414 = vmatprep.subr.bf16.mxu1 %v3776_v15 }
 0x9fb   :  { %v999_v43 = vpop.f32.mrb[28].mxu0 }
 0x9fc   :  { %v3400_v45 = vpop.f32.mrb[29].mxu0 }
 0x9fd   :  { %v1002_v46 = vpop.f32.mrb[30].mxu0 }
 0x9fe   :  { %v3401_v48 = vpop.f32.mrb[31].mxu0 }
 0xa8d   :  { %v1099_v51 = vpop.f32.mrb[32].mxu0 }
 0xa8e   :  { %v1155_v52 = vmul.f32 0.35355338, %v1099_v51  ;;  %v3412_v54 = vpop.f32.mrb[33].mxu0 }
 0xa8f   :  { %v1102_v55 = vpop.f32.mrb[34].mxu0 }
 0xa90   :  { %v3413_v56 = vpop.f32.mrb[35].mxu0  ;;  %v1157_v57 = vadd.f32 %v3947_v53, %v1155_v52  ;;  %v1106_v53 = vpop.permute.xlu1 %1105  ;;  %v3148_v55 = vld [vmem:[%s4539_s6] ss:$0 sm:$0xff] }
 0xa92   :  { %v1159_v59 = vsel %vm228_vm2, %v1157_v57, -inf }
 0xa93   :  { %1160 = vmax.xlane.f32.xlu0 %v1159_v59 }
 0xa94   :  { %v951_v61 = vpop.f32.mrb[24].mxu1 }
 0xa95   :  { %v1005_v62 = vpack.c.bf16 %v999_v43, %v951_v61  ;;  %v3394_v63 = vpop.f32.mrb[25].mxu1 }
 0xa96   :  { %v954_v0 = vpop.f32.mrb[26].mxu1 }
 0xa97   :  { %v3395_v2 = vpop.f32.mrb[27].mxu1  ;;  %3405 = vmatmul.mubr.msk.bf16.vlgmr.msra.gmra.mrb[28].mxu1 %vm228_vm2, %v1005_v62 }
 0xa98   :  { %3415 = vmatpush3.bf16.xpose.msra.mxu1 %v1113_v1  ;;  %3416 = vmatprep.mubr.msk.bf16.mxu1 %vm3777_vm1, %v3776_v15 }
 0xa99   :  { %3426 = vmatprep.subr.bf16.mxu1 %v3776_v15 }
 0xa9f   :  { %3417 = vmatmul.mubr.msk.bf16.vlgmr.msra.gmra.mrb[32].mxu1 %vm228_vm2, %v1106_v53 }
 0xaa0   :  { %3428 = vmatprep.mubr.msk.bf16.mxu1 %vm3777_vm1, %v3776_v15 }
 0xb20   :  { %v1161_v3 = vpop.xlane.xlu0 %1160 }
 0xb21   :  { %v1165_v4 = vsub.f32 %v1157_v57, %v1161_v3 }
 0xb23   :  { %v1167_v6 = vmul.f32 1.442695, %v1165_v4 }
 0xb25   :  { %3684 = vpow2.f32 %v1167_v6 }
 0xb2f   :  { %v3685_v7 = vpop.eup %3684 }
 0xb30   :  { %v1171_v9 = vsel %vm228_vm2, %v3685_v7, 0.0 }
 0xb31   :  { %1172 = vadd.xlane.f32.xlu0 %v1171_v9 }
 0xb6a   :  { %v1046_v10 = vpop.f32.mrb[28].mxu1 }
 0xb6b   :  { %v1053_v11 = vadd.f32 %v1046_v10, %v4067_v5  ;;  %v3406_v12 = vpop.f32.mrb[29].mxu1 }
 0xb6c   :  { %v1049_v13 = vpop.f32.mrb[30].mxu1 }
 0xb6d   :  { %v4110_v14 = vadd.f32 %v1049_v13, %v4069_v8  ;;  %v3407_v16 = vpop.f32.mrb[31].mxu1 }
 0xb6e   :  { %v3639_v16 = vld [vmem:[%s4541_s8 + $0x8] sm:$0xff]  }
 0xb72   :  { %v1149_v17 = vpop.f32.mrb[32].mxu1 }
 0xb73   :  { %v1156_v18 = vmul.f32 0.35355338, %v1149_v17  ;;  %v3418_v19 = vpop.f32.mrb[33].mxu1 }
 0xb74   :  { %v1152_v20 = vpop.f32.mrb[34].mxu1 }
 0xb75   :  { %v3419_v21 = vpop.f32.mrb[35].mxu1  ;;  %v1158_v22 = vadd.f32 %v3952_v58, %v1156_v18 }
 0xb77   :  { %v1162_v23 = vsel %vm228_vm2, %v1158_v22, -inf }
 0xb78   :  { %1163 = vmax.xlane.f32.xlu1 %v1162_v23  ;;  %v4158_v23 = vld [vmem:[%s4540_s7] sm:$0xf] }
 0xb89   :  { %1231 = vrot.lane.b32.xlu1 %v3926_v47, %s4551_s29 }
 0xbbe   :  { %v1173_v31 = vpop.xlane.xlu0 %1172 }
 0xc05   :  { %v1164_v5 = vpop.xlane.xlu1 %1163 }
 0xc06   :  { %v1166_v26 = vsub.f32 %v1158_v22, %v1164_v5  ;;  %v1368_v5 = vrot.slane %v4158_v23, %v3902_v25 }
 0xc08   :  { %v1169_v27 = vmul.f32 1.442695, %v1166_v26 }
 0xc09   :  { %v1232_v8 = vpop.permute.xlu1 %1231 }
 0xc0a   :  { %3686 = vpow2.f32 %v1169_v27  ;;  %v1237_v28 = vsel %vm369_vm3, %v1232_v8, 0 }
 0xc0b   :  { %3427 = vmatpush3.bf16.msra.mxu1 %v1237_v28  ;;  %3688 = vrcp.f32 %v1173_v31 }
 0xc0c   :  { %3438 = vmatprep.subr.bf16.mxu1 %v3776_v15 }
 0xc14   :  { %v3687_v29 = vpop.eup %3686 }
 0xc15   :  { %v1174_v58 = vsel %vm228_vm2, %v3687_v29, 0.0  ;;  %v3689_v47 = vpop.eup %3688 }
 0xc16   :  { %1175 = vadd.xlane.f32.xlu0 %v1174_v58  ;;  %v1179_v33 = vmul.f32 %v3689_v47, %v3685_v7  ;;  %v1374_v58 = vrot.slane %v4158_v23, %v3909_v30 }
 0xc18   :  { %v1181_v39 = vpack.c.bf16 %v1179_v33, %v1179_v33 }
 0xc2c   :  { %1183 = vrot.lane.b32.xlu0 %v3924_v44, %s4551_s29 }
 0xca3   :  { %v1176_v32 = vpop.xlane.xlu0 %1175 }
 0xca4   :  { %3690 = vrcp.f32 %v1176_v32 }
 0xca7   :  { %v1184_v34 = vpop.permute.xlu0 %1183 }
 0xca8   :  { %v1189_v35 = vsel %vm369_vm3, %v1184_v34, 0  ;;  %v3640_v34 = vld [vmem:[%s4543_s10] sm:$0xff]  }
 0xca9   :  { %3421 = vmatpush3.bf16.msra.mxu0 %v1189_v35  ;;  %v3641_v35 = vld [vmem:[%s4543_s10 + $0x8] sm:$0xff]  }
 0xcaa   :  { %3432 = vmatprep.subr.bf16.mxu0 %v3776_v15 }
 0xcac   :  { %3423 = vmatmul.mubr.msk.bf16.vlgmr.msra.gmra.mrb[36].mxu0 %vm228_vm2, %v1181_v39  ;;  %v3642_v39 = vld [vmem:[%s4543_s10 + $0x10] sm:$0xff]  }
 0xcad   :  { %3434 = vmatprep.mubr.msk.bf16.mxu0 %vm3777_vm1, %v3776_v15  ;;  %3433 = vmatpush3.bf16.msra.mxu0 %v1284_v42 }
 0xcae   :  { %v3691_v40 = vpop.eup %3690  ;;  %3446 = vmatprep.subr.bf16.mxu0 %v3776_v15 }
 0xcaf   :  { %v1180_v44 = vmul.f32 %v3691_v40, %v3687_v29  ;;  %v3643_v40 = vld [vmem:[%s4543_s10 + $0x18] sm:$0xff]  }
 0xcb1   :  { %v1182_v38 = vpack.c.bf16 %v1180_v44, %v1180_v44  ;;  %v3149_v44 = vld [vmem:[%s4542_s9] ss:$0 sm:$0xff] }
 0xcb3   :  { %3429 = vmatmul.mubr.msk.bf16.vlgmr.msra.gmra.mrb[36].mxu1 %vm228_vm2, %v1182_v38 }
 0xcb4   :  { %3442 = vmatprep.mubr.msk.bf16.mxu1 %vm3777_vm1, %v3776_v15 }
 0xd7f   :  { %v1225_v43 = vpop.f32.mrb[36].mxu0 }
 0xd80   :  { %v3424_v45 = vpop.f32.mrb[37].mxu0 }
 0xd81   :  { %v1228_v46 = vpop.f32.mrb[38].mxu0 }
 0xd82   :  { %v3425_v48 = vpop.f32.mrb[39].mxu0 }
 0xd86   :  { %v1273_v49 = vpop.f32.mrb[36].mxu1 }
 0xd87   :  { %v1279_v50 = vpack.c.bf16 %v1273_v49, %v1225_v43  ;;  %v3430_v51 = vpop.f32.mrb[37].mxu1 }
 0xd88   :  { %v1276_v52 = vpop.f32.mrb[38].mxu1 }
 0xd89   :  { %v3431_v54 = vpop.f32.mrb[39].mxu1  ;;  %3435 = vmatmul.mubr.msk.bf16.vlgmr.msra.gmra.mrb[40].mxu0 %vm228_vm2, %v1279_v50 }
 0xd8a   :  { %3454 = vmatprep.mubr.msk.bf16.mxu0 %vm3777_vm1, %v3776_v15  ;;  %3447 = vmatpush3.bf16.msra.mxu0 %v3640_v34  ;;  %v1564_v34 = vsub.s32 2, %v3899_v24 }
 0xd8b   :  { %3448 = vmatprep.subr.bf16.mxu0 %v3776_v15 }
 0xd8e   :  { %3449 = vmatpush3.bf16.msra.mxu0 %v3641_v35  ;;  %v1565_v35 = vrot.slane %v4158_v23, %v1564_v34 }
 0xd8f   :  { %3450 = vmatprep.subr.bf16.mxu0 %v3776_v15 }
 0xd92   :  { %3451 = vmatpush3.bf16.msra.mxu0 %v3642_v39  ;;  %v1570_v39 = vsub.s32 3, %v3899_v24  ;;  %v3654_v24 = vld [vmem:[%s4547_s14] sm:$0xff]  }
 0xd93   :  { %3452 = vmatprep.subr.bf16.mxu0 %v3776_v15 }
 0xd96   :  { %3453 = vmatpush3.bf16.msra.mxu0 %v3643_v40 }
 0xd97   :  { %3472 = vmatprep.subr.bf16.mxu0 %v3776_v15 }
 0xe5c   :  { %v1320_v56 = vpop.f32.mrb[40].mxu0 }
 0xe5d   :  { %v1327_v57 = vadd.f32 %v1320_v56, %v1053_v11  ;;  %v3436_v59 = vpop.f32.mrb[41].mxu0 }
 0xe5e   :  { %v1323_v60 = vpop.f32.mrb[42].mxu0 }
 0xe5f   :  { %v1335_v61 = vadd.f32 %v3148_v55, %v1327_v57  ;;  %v1328_v62 = vadd.f32 %v1323_v60, %v4110_v14  ;;  %v3437_v63 = vpop.f32.mrb[43].mxu0 }
 0xe61   :  { %v1336_v0 = vadd.f32 %v3148_v55, %v1328_v62  ;;  %v1337_v1 = vadd.f32 %v1335_v61, %v3912_v36 }
 0xe63   :  { %v1339_v2 = vsel %vm120_vm0, %v1337_v1, 0.0  ;;  %v1338_v53 = vadd.f32 %v1336_v0, %v3914_v37  ;;  %v3638_v37 = vld [vmem:[%s4541_s8] sm:$0xff]  }
 0xe64   :  { %1340 = vadd.xlane.f32.xlu1 %v1339_v2  ;;  %3439 = vmatpush3.bf16.msra.mxu1 %v3638_v37 }
 0xe65   :  { %v1342_v3 = vsel %vm120_vm0, %v1338_v53, 0.0  ;;  %3440 = vmatprep.subr.bf16.mxu1 %v3776_v15 }
 0xe66   :  { %1343 = vadd.xlane.f32.xlu0 %v1342_v3 }
 0xe68   :  { %3441 = vmatpush3.bf16.msra.mxu1 %v3639_v16 }
 0xe69   :  { %3458 = vmatprep.subr.bf16.mxu1 %v3776_v15 }
 0xef1   :  { %v1341_v4 = vpop.xlane.xlu1 %1340 }
 0xef2   :  { %v1345_v6 = vmul.f32 0.03125, %v1341_v4  ;;  %v3153_v4 = vld [vmem:[%s4544_s11] ss:$0 sm:$0xff] }
 0xef3   :  { %v1344_v7 = vpop.xlane.xlu0 %1343 }
 0xef4   :  { %v1347_v9 = vsub.f32 %v1337_v1, %v1345_v6  ;;  %v1346_v10 = vmul.f32 0.03125, %v1344_v7 }
 0xef6   :  { %v1348_v11 = vsub.f32 %v1338_v53, %v1346_v10  ;;  %v1349_v12 = vmul.f32 %v1347_v9, %v1347_v9 }
 0xef8   :  { %v1351_v13 = vsel %vm120_vm0, %v1349_v12, 0.0  ;;  %v1350_v14 = vmul.f32 %v1348_v11, %v1348_v11 }
 0xef9   :  { %1352 = vadd.xlane.f32.xlu0 %v1351_v13 }
 0xefa   :  { %v1354_v36 = vsel %vm120_vm0, %v1350_v14, 0.0 }
 0xefb   :  { %1355 = vadd.xlane.f32.xlu1 %v1354_v36 }
 0xf86   :  { %v1353_v17 = vpop.xlane.xlu0 %1352 }
 0xf87   :  { %v1357_v18 = vmul.f32 0.03125, %v1353_v17 }
 0xf88   :  { %v1356_v19 = vpop.xlane.xlu1 %1355 }
 0xf89   :  { %v1359_v20 = vadd.f32 1e-05, %v1357_v18  ;;  %v1358_v21 = vmul.f32 0.03125, %v1356_v19 }
 0xf8b   :  { %3692 = vrsqrt.f32 %v1359_v20  ;;  %v1360_v22 = vadd.f32 1e-05, %v1358_v21 }
 0xf8d   :  { %3694 = vrsqrt.f32 %v1360_v22 }
 0xf95   :  { %v3693_v26 = vpop.eup %3692 }
 0xf96   :  { %v1363_v27 = vmul.f32 %v3693_v26, %v1347_v9 }
 0xf97   :  { %v3695_v8 = vpop.eup %3694 }
 0xf98   :  { %v1369_v28 = vmul.f32 %v1368_v5, %v1363_v27  ;;  %v1364_v29 = vmul.f32 %v3695_v8, %v1348_v11  ;;  %v3644_v8 = vld [vmem:[%s4536_s3 + $0x10] sm:$0xff]  }
 0xf9a   :  { %v1370_v31 = vmul.f32 %v1368_v5, %v1364_v29  ;;  %v1375_v47 = vadd.f32 %v1374_v58, %v1369_v28  ;;  %v3645_v28 = vld [vmem:[%s4536_s3 + $0x18] sm:$0xff]  }
 0xf9c   :  { %v1376_v32 = vadd.f32 %v1374_v58, %v1370_v31 }
 0xf9e   :  { %v1377_v33 = vpack.c.bf16 %v1376_v32, %v1375_v47 }
 0xfa0   :  { %3443 = vmatmul.mubr.msk.bf16.vlgmr.msra.gmra.mrb[40].mxu1 %vm120_vm0, %v1377_v33 }
 0xfa1   :  { %3462 = vmatprep.mubr.msk.bf16.mxu1 %vm3777_vm1, %v3776_v15  ;;  %3459 = vmatpush3.bf16.msra.mxu1 %v3644_v8 }
 0xfa2   :  { %3460 = vmatprep.subr.bf16.mxu1 %v3776_v15 }
 0xfa5   :  { %3461 = vmatpush3.bf16.msra.mxu1 %v3645_v28 }
 0xfa6   :  { %3466 = vmatprep.subr.bf16.mxu1 %v3776_v15 }
0x1073   :  { %v1433_v38 = vpop.f32.mrb[40].mxu1 }
0x1074   :  { %v1434_v41 = vadd.f32 %v3149_v44, %v1433_v38  ;;  %v3444_v42 = vpop.f32.mrb[41].mxu1 }
0x1075   :  { %v1436_v43 = vpop.f32.mrb[42].mxu1 }
0x1076   :  { %v1440_v45 = vmul.f32 %v1434_v41, %v1434_v41  ;;  %v1437_v46 = vadd.f32 %v3149_v44, %v1436_v43  ;;  %v3445_v48 = vpop.f32.mrb[43].mxu1  ;;  %v1571_v43 = vrot.slane %v4158_v23, %v1570_v39 }
0x1078   :  { %v1442_v49 = vmul.f32 %v1440_v45, %v1434_v41  ;;  %v1441_v50 = vmul.f32 %v1437_v46, %v1437_v46 }
0x107a   :  { %v1444_v51 = vmul.f32 0.044715, %v1442_v49  ;;  %v1443_v52 = vmul.f32 %v1441_v50, %v1437_v46  ;;  %v3159_v50 = vld [vmem:[%s4537_s4 + $0x1] ss:$0 sm:$0xff] }
0x107c   :  { %v1446_v54 = vadd.f32 %v1444_v51, %v1434_v41  ;;  %v1445_v55 = vmul.f32 0.044715, %v1443_v52 }
0x107e   :  { %v1448_v56 = vmul.f32 0.7978846, %v1446_v54  ;;  %v1447_v57 = vadd.f32 %v1445_v55, %v1437_v46 }
0x1080   :  { %3696 = vtanh.f32 %v1448_v56  ;;  %v1449_v59 = vmul.f32 0.7978846, %v1447_v57 }
0x1082   :  { %3698 = vtanh.f32 %v1449_v59 }
0x108a   :  { %v3697_v60 = vpop.eup %3696 }
0x108b   :  { %v1452_v61 = vadd.f32 1.0, %v3697_v60 }
0x108c   :  { %v3699_v62 = vpop.eup %3698 }
0x108d   :  { %v1454_v63 = vmul.f32 0.5, %v1452_v61  ;;  %v1453_v0 = vadd.f32 1.0, %v3699_v62 }
0x108f   :  { %v1455_v1 = vmul.f32 0.5, %v1453_v0  ;;  %v1456_v2 = vmul.f32 %v1454_v63, %v1434_v41 }
0x1091   :  { %v1457_v53 = vmul.f32 %v1455_v1, %v1437_v46 }
0x1093   :  { %v1458_v3 = vpack.c.bf16 %v1457_v53, %v1456_v2 }
0x1095   :  { %3455 = vmatmul.mubr.msk.bf16.vlgmr.msra.gmra.mrb[44].mxu0 %vm1489_vm4, %v1458_v3 }
0x1096   :  { %3474 = vmatprep.mubr.msk.bf16.mxu0 %vm3777_vm1, %v3776_v15 }
0x1168   :  { %v1527_v6 = vpop.f32.mrb[44].mxu0 }
0x1169   :  { %v1528_v7 = vadd.f32 %v3153_v4, %v1527_v6  ;;  %v3456_v9 = vpop.f32.mrb[45].mxu0 }
0x116a   :  { %v1530_v10 = vpop.f32.mrb[46].mxu0  ;;  %v4247_v9 = vld [vmem:[%s4534_s1] ss:$0 sm:$0xff] }
0x116b   :  { %v1531_v11 = vadd.f32 %v3153_v4, %v1530_v10  ;;  %v3457_v12 = vpop.f32.mrb[47].mxu0  ;;  %v1534_v13 = vadd.f32 %v1528_v7, %v1375_v47 }
0x116d   :  { %v1536_v14 = vsel %vm120_vm0, %v1534_v13, 0.0  ;;  %v1535_v36 = vadd.f32 %v1531_v11, %v1376_v32 }
0x116e   :  { %1537 = vadd.xlane.f32.xlu0 %v1536_v14  ;;  %v4254_v14 = vld [vmem:[%s4534_s1 + $0x1] ss:$0 sm:$0xff] }
0x116f   :  { %v1539_v37 = vsel %vm120_vm0, %v1535_v36, 0.0 }
0x1170   :  { %1540 = vadd.xlane.f32.xlu1 %v1539_v37 }
0x11fb   :  { %v1538_v16 = vpop.xlane.xlu0 %1537 }
0x11fc   :  { %v1542_v17 = vmul.f32 0.03125, %v1538_v16 }
0x11fd   :  { %v1541_v18 = vpop.xlane.xlu1 %1540 }
0x11fe   :  { %v1544_v19 = vsub.f32 %v1534_v13, %v1542_v17  ;;  %v1543_v20 = vmul.f32 0.03125, %v1541_v18 }
0x1200   :  { %v1545_v21 = vsub.f32 %v1535_v36, %v1543_v20  ;;  %v1546_v22 = vmul.f32 %v1544_v19, %v1544_v19 }
0x1202   :  { %v1548_v5 = vsel %vm120_vm0, %v1546_v22, 0.0  ;;  %v1547_v26 = vmul.f32 %v1545_v21, %v1545_v21 }
0x1203   :  { %1549 = vadd.xlane.f32.xlu0 %v1548_v5 }
0x1204   :  { %v1551_v27 = vsel %vm120_vm0, %v1547_v26, 0.0 }
0x1205   :  { %1552 = vadd.xlane.f32.xlu1 %v1551_v27 }
0x1290   :  { %v1550_v29 = vpop.xlane.xlu0 %1549 }
0x1291   :  { %v1554_v58 = vmul.f32 0.03125, %v1550_v29 }
0x1292   :  { %v1553_v31 = vpop.xlane.xlu1 %1552 }
0x1293   :  { %v1556_v47 = vadd.f32 1e-05, %v1554_v58  ;;  %v1555_v32 = vmul.f32 0.03125, %v1553_v31 }
0x1295   :  { %3700 = vrsqrt.f32 %v1556_v47  ;;  %v1557_v33 = vadd.f32 1e-05, %v1555_v32 }
0x1297   :  { %3702 = vrsqrt.f32 %v1557_v33 }
0x129f   :  { %v3701_v40 = vpop.eup %3700 }
0x12a0   :  { %v1560_v44 = vmul.f32 %v3701_v40, %v1544_v19 }
0x12a1   :  { %v3703_v38 = vpop.eup %3702 }
0x12a2   :  { %v1566_v41 = vmul.f32 %v1565_v35, %v1560_v44  ;;  %v1561_v42 = vmul.f32 %v3703_v38, %v1545_v21 }
0x12a4   :  { %v1567_v45 = vmul.f32 %v1565_v35, %v1561_v42  ;;  %v4212_v46 = vadd.f32 %v1571_v43, %v1566_v41 }
0x12a6   :  { %v4214_v48 = vadd.f32 %v1571_v43, %v1567_v45 }
0x12a8   :  { %v1574_v49 = vpack.c.bf16 %v4214_v48, %v4212_v46 }
0x12aa   :  { %3463 = vmatmul.mubr.msk.bf16.vlgmr.msra.gmra.mrb[44].mxu1 %vm120_vm0, %v1574_v49 }
0x12ab   :  { %3468 = vmatprep.mubr.msk.bf16.mxu1 %vm3777_vm1, %v3776_v15 }
0x137d   :  { %v1630_v51 = vpop.f32.mrb[44].mxu1 }
0x137e   :  { %v1631_v52 = vadd.f32 %v3159_v50, %v1630_v51  ;;  %v3464_v23 = vpop.f32.mrb[45].mxu1 }
0x137f   :  { %v1633_v54 = vpop.f32.mrb[46].mxu1 }
0x1380   :  { %v4224_v55 = vpack.c.bf16 %v1631_v52, %v1631_v52  ;;  %v1634_v56 = vadd.f32 %v3159_v50, %v1633_v54  ;;  %v3465_v57 = vpop.f32.mrb[47].mxu1 }
0x1382   :  { %v4226_v59 = vpack.c.bf16 %v1634_v56, %v1634_v56  ;;  %1640 = vrot.lane.b32.xlu0 %v4224_v55, %s3778_s18 }
0x1384   :  { %1689 = vrot.lane.b32.xlu1 %v4226_v59, %s3778_s18 }
0x13f4   :  { %v1641_v60 = vpop.permute.xlu0 %1640 }
0x13f5   :  { %v1646_v61 = vsel %vm228_vm2, %v1641_v60, 0 }
0x13f6   :  { %3467 = vmatpush3.bf16.xpose.msra.mxu1 %v1646_v61  ;;  %v1690_v62 = vpop.permute.xlu1 %1689 }
0x13f7   :  { %v1695_v63 = vsel %vm228_vm2, %v1690_v62, 0  ;;  %3478 = vmatprep.subr.bf16.mxu1 %v3776_v15 }
0x13f8   :  { %3473 = vmatpush3.bf16.xpose.msra.mxu0 %v1695_v63 }
0x13f9   :  { %3484 = vmatprep.subr.bf16.mxu0 %v3776_v15 }
0x13fd   :  { %3469 = vmatmul.mubr.msk.bf16.vlgmr.msra.gmra.mrb[48].mxu1 %vm228_vm2, %v4224_v55 }
0x13fe   :  { %3480 = vmatprep.mubr.msk.bf16.mxu1 %vm3777_vm1, %v3776_v15 }
0x13ff   :  { %3475 = vmatmul.mubr.msk.bf16.vlgmr.msra.gmra.mrb[48].mxu0 %vm228_vm2, %v4226_v59 }
0x1400   :  { %3486 = vmatprep.mubr.msk.bf16.mxu0 %vm3777_vm1, %v3776_v15 }
0x14d0   :  { %v1682_v0 = vpop.f32.mrb[48].mxu1 }
0x14d1   :  { %v1737_v1 = vmul.f32 0.35355338, %v1682_v0  ;;  %v3470_v2 = vpop.f32.mrb[49].mxu1 }
0x14d2   :  { %v1685_v53 = vpop.f32.mrb[50].mxu1  ;;  %v1731_v3 = vpop.f32.mrb[48].mxu0 }
0x14d3   :  { %v1738_v4 = vmul.f32 0.35355338, %v1731_v3  ;;  %v3471_v6 = vpop.f32.mrb[51].mxu1  ;;  %v3476_v7 = vpop.f32.mrb[49].mxu0  ;;  %v1739_v10 = vadd.f32 %v4247_v9, %v1737_v1 }
0x14d4   :  { %v1734_v11 = vpop.f32.mrb[50].mxu0 }
0x14d5   :  { %v3477_v12 = vpop.f32.mrb[51].mxu0  ;;  %v1741_v13 = vsel %vm228_vm2, %v1739_v10, -inf  ;;  %v1740_v36 = vadd.f32 %v4254_v14, %v1738_v4 }
0x14d6   :  { %1742 = vmax.xlane.f32.xlu1 %v1741_v13 }
0x14d7   :  { %v1744_v37 = vsel %vm228_vm2, %v1740_v36, -inf }
0x14d8   :  { %1745 = vmax.xlane.f32.xlu0 %v1744_v37 }
0x14e7   :  { %1813 = vrot.lane.b32.xlu1 %v4226_v59, %s3779_s23 }
0x14eb   :  { %1864 = vrot.lane.b32.xlu1 %v4224_v55, %s3780_s24 }
0x1563   :  { %v1743_v16 = vpop.xlane.xlu1 %1742 }
0x1564   :  { %v1747_v17 = vsub.f32 %v1739_v10, %v1743_v16 }
0x1565   :  { %v1746_v18 = vpop.xlane.xlu0 %1745 }
0x1566   :  { %v1749_v19 = vmul.f32 1.442695, %v1747_v17  ;;  %v1748_v20 = vsub.f32 %v1740_v36, %v1746_v18 }
0x1567   :  { %v1814_v21 = vpop.permute.xlu1 %1813 }
0x1568   :  { %3704 = vpow2.f32 %v1749_v19  ;;  %v1751_v22 = vmul.f32 1.442695, %v1748_v20  ;;  %v1819_v5 = vsel %vm369_vm3, %v1814_v21, 0 }
0x1569   :  { %3485 = vmatpush3.bf16.msra.mxu0 %v1819_v5 }
0x156a   :  { %3706 = vpow2.f32 %v1751_v22  ;;  %3496 = vmatprep.subr.bf16.mxu0 %v3776_v15 }
0x156b   :  { %v1865_v29 = vpop.permute.xlu1 %1864 }
0x156c   :  { %v1870_v42 = vsel %vm228_vm2, %v1865_v29, 0 }
0x1572   :  { %v3705_v26 = vpop.eup %3704 }
0x1573   :  { %v1753_v27 = vsel %vm228_vm2, %v3705_v26, 0.0 }
0x1574   :  { %v3707_v8 = vpop.eup %3706  ;;  %1754 = vadd.xlane.f32.xlu0 %v1753_v27 }
0x1575   :  { %v1756_v28 = vsel %vm228_vm2, %v3707_v8, 0.0 }
0x1576   :  { %1757 = vadd.xlane.f32.xlu1 %v1756_v28 }
0x1587   :  { %1914 = vrot.lane.b32.xlu1 %v4226_v59, %s3780_s24 }
0x158a   :  { %1765 = vrot.lane.b32.xlu0 %v4224_v55, %s3779_s23 }
0x158b   :  { %1912 = vrot.lane.b32.xlu1 %v4226_v59, %s3781_s25 }
0x158e   :  { %1862 = vrot.lane.b32.xlu0 %v4224_v55, %s3781_s25 }
0x1601   :  { %v1755_v58 = vpop.xlane.xlu0 %1754 }
0x1602   :  { %3708 = vrcp.f32 %v1755_v58 }
0x1603   :  { %v1758_v31 = vpop.xlane.xlu1 %1757 }
0x1604   :  { %3710 = vrcp.f32 %v1758_v31 }
0x1605   :  { %v1766_v47 = vpop.permute.xlu0 %1765 }
0x1606   :  { %v1771_v32 = vsel %vm369_vm3, %v1766_v47, 0 }
0x1607   :  { %3479 = vmatpush3.bf16.msra.mxu1 %v1771_v32  ;;  %v1915_v41 = vpop.permute.xlu1 %1914  ;;  %v75_v32 = vld [vmem:[%s4538_s5 + $0x14] sm:$0xf] }
0x1608   :  { %3490 = vmatprep.subr.bf16.mxu1 %v3776_v15  ;;  %v1920_v45 = vsel %vm228_vm2, %v1915_v41, 0 }
0x1609   :  { %v1863_v49 = vpop.permute.xlu0 %1862 }
0x160b   :  { %v1913_v50 = vpop.permute.xlu1 %1912 }
0x160c   :  { %v3709_v33 = vpop.eup %3708 }
0x160d   :  { %v1761_v35 = vmul.f32 %v3709_v33, %v3705_v26 }
0x160e   :  { %v3711_v40 = vpop.eup %3710 }
0x160f   :  { %v1762_v44 = vmul.f32 %v3711_v40, %v3707_v8  ;;  %v1763_v38 = vpack.c.bf16 %v1761_v35, %v1761_v35  ;;  %v2091_v40 = vsel %vm369_vm3, %v75_v32, 0 }
0x1611   :  { %3481 = vmatmul.mubr.msk.bf16.vlgmr.msra.gmra.mrb[52].mxu1 %vm228_vm2, %v1763_v38  ;;  %v1764_v43 = vpack.c.bf16 %v1762_v44, %v1762_v44  ;;  %v74_v38 = vld [vmem:[%s4538_s5 + $0x10] sm:$0xf] }
0x1612   :  { %3491 = vmatpush3.bf16.xpose.msra.mxu1 %v1870_v42  ;;  %3492 = vmatprep.mubr.msk.bf16.mxu1 %vm3777_vm1, %v3776_v15 }
0x1613   :  { %3487 = vmatmul.mubr.msk.bf16.vlgmr.msra.gmra.mrb[52].mxu0 %vm228_vm2, %v1764_v43  ;;  %3502 = vmatprep.subr.bf16.mxu1 %v3776_v15  ;;  %v2138_v43 = vsel %vm369_vm3, %v74_v38, 0 }
0x1614   :  { %3497 = vmatpush3.bf16.xpose.msra.mxu0 %v1920_v45  ;;  %3498 = vmatprep.mubr.msk.bf16.mxu0 %vm3777_vm1, %v3776_v15 }
0x1615   :  { %3508 = vmatprep.subr.bf16.mxu0 %v3776_v15 }
0x1619   :  { %3493 = vmatmul.mubr.msk.bf16.vlgmr.msra.gmra.mrb[56].mxu1 %vm228_vm2, %v1863_v49 }
0x161a   :  { %3504 = vmatprep.mubr.msk.bf16.mxu1 %vm3777_vm1, %v3776_v15 }
0x161b   :  { %3499 = vmatmul.mubr.msk.bf16.vlgmr.msra.gmra.mrb[56].mxu0 %vm228_vm2, %v1913_v50 }
0x161c   :  { %3510 = vmatprep.mubr.msk.bf16.mxu0 %vm3777_vm1, %v3776_v15 }
0x16e4   :  { %v4292_v51 = vpop.f32.mrb[52].mxu1 }
0x16e5   :  { %v3482_v52 = vpop.f32.mrb[53].mxu1 }
0x16e6   :  { %v1810_v23 = vpop.f32.mrb[54].mxu1  ;;  %v4294_v54 = vpop.f32.mrb[52].mxu0 }
0x16e7   :  { %v1861_v56 = vpack.c.bf16 %v4294_v54, %v4292_v51  ;;  %v3483_v57 = vpop.f32.mrb[55].mxu1  ;;  %v3488_v60 = vpop.f32.mrb[53].mxu0 }
0x16e8   :  { %v1858_v61 = vpop.f32.mrb[54].mxu0 }
0x16e9   :  { %v3489_v62 = vpop.f32.mrb[55].mxu0 }
0x16ec   :  { %v1906_v63 = vpop.f32.mrb[56].mxu1 }
0x16ed   :  { %v1962_v0 = vmul.f32 0.35355338, %v1906_v63  ;;  %v3494_v1 = vpop.f32.mrb[57].mxu1 }
0x16ee   :  { %v1909_v2 = vpop.f32.mrb[58].mxu1  ;;  %v1956_v53 = vpop.f32.mrb[56].mxu0 }
0x16ef   :  { %v1963_v3 = vmul.f32 0.35355338, %v1956_v53  ;;  %v3495_v4 = vpop.f32.mrb[59].mxu1  ;;  %v3500_v6 = vpop.f32.mrb[57].mxu0  ;;  %v1964_v7 = vadd.f32 %v4247_v9, %v1962_v0 }
0x16f0   :  { %v1959_v10 = vpop.f32.mrb[58].mxu0 }
0x16f1   :  { %v3501_v11 = vpop.f32.mrb[59].mxu0  ;;  %v1966_v12 = vsel %vm228_vm2, %v1964_v7, -inf  ;;  %v1965_v13 = vadd.f32 %v4254_v14, %v1963_v3 }
0x16f2   :  { %1967 = vmax.xlane.f32.xlu0 %v1966_v12 }
0x16f3   :  { %v1969_v36 = vsel %vm228_vm2, %v1965_v13, -inf }
0x16f4   :  { %1970 = vmax.xlane.f32.xlu1 %v1969_v36 }
0x1705   :  { %2038 = vrot.lane.b32.xlu1 %v4226_v59, %s3782_s26 }
0x1709   :  { %2183 = vrot.lane.b32.xlu1 %v4224_v55, %s3783_s27 }
0x170d   :  { %2233 = vrot.lane.b32.xlu1 %v4226_v59, %s3783_s27 }
0x1711   :  { %2231 = vrot.lane.b32.xlu1 %v4226_v59, %s3784_s28 }
0x177f   :  { %v1968_v37 = vpop.xlane.xlu0 %1967 }
0x1780   :  { %v1972_v16 = vsub.f32 %v1964_v7, %v1968_v37 }
0x1781   :  { %v1971_v17 = vpop.xlane.xlu1 %1970 }
0x1782   :  { %v1974_v18 = vmul.f32 1.442695, %v1972_v16  ;;  %v1973_v19 = vsub.f32 %v1965_v13, %v1971_v17 }
0x1784   :  { %3712 = vpow2.f32 %v1974_v18  ;;  %v1976_v20 = vmul.f32 1.442695, %v1973_v19 }
0x1785   :  { %v2039_v21 = vpop.permute.xlu1 %2038 }
0x1786   :  { %3714 = vpow2.f32 %v1976_v20  ;;  %v2044_v22 = vsel %vm369_vm3, %v2039_v21, 0 }
0x1787   :  { %3509 = vmatpush3.bf16.msra.mxu0 %v2044_v22 }
0x1788   :  { %3520 = vmatprep.subr.bf16.mxu0 %v3776_v15 }
0x1789   :  { %v2184_v45 = vpop.permute.xlu1 %2183 }
0x178a   :  { %v2189_v63 = vsel %vm228_vm2, %v2184_v45, 0 }
0x178d   :  { %v2234_v49 = vpop.permute.xlu1 %2233 }
0x178e   :  { %v3713_v5 = vpop.eup %3712  ;;  %v2239_v50 = vsel %vm228_vm2, %v2234_v49, 0 }
0x178f   :  { %v1978_v26 = vsel %vm228_vm2, %v3713_v5, 0.0 }
0x1790   :  { %v3715_v27 = vpop.eup %3714  ;;  %1979 = vadd.xlane.f32.xlu0 %v1978_v26 }
0x1791   :  { %v1981_v8 = vsel %vm228_vm2, %v3715_v27, 0.0  ;;  %v2232_v52 = vpop.permute.xlu1 %2231 }
0x1794   :  { %1982 = vadd.xlane.f32.xlu0 %v1981_v8 }
0x17aa   :  { %1990 = vrot.lane.b32.xlu0 %v4224_v55, %s3782_s26  ;;  %s4557_s26 = smov 104  }
0x17ae   :  { %2181 = vrot.lane.b32.xlu0 %v4224_v55, %s3784_s28 }
0x181d   :  { %v1980_v28 = vpop.xlane.xlu0 %1979 }
0x181e   :  { %3716 = vrcp.f32 %v1980_v28 }
0x1821   :  { %v1983_v29 = vpop.xlane.xlu0 %1982 }
0x1822   :  { %3718 = vrcp.f32 %v1983_v29 }
0x1825   :  { %v1991_v58 = vpop.permute.xlu0 %1990 }
0x1826   :  { %v1996_v31 = vsel %vm369_vm3, %v1991_v58, 0 }
0x1827   :  { %3503 = vmatpush3.bf16.msra.mxu1 %v1996_v31 }
0x1828   :  { %v3717_v47 = vpop.eup %3716  ;;  %3514 = vmatprep.subr.bf16.mxu1 %v3776_v15 }
0x1829   :  { %v1986_v33 = vmul.f32 %v3717_v47, %v3713_v5  ;;  %v2182_v53 = vpop.permute.xlu0 %2181 }
0x182b   :  { %v1988_v35 = vpack.c.bf16 %v1986_v33, %v1986_v33 }
0x182c   :  { %v3719_v44 = vpop.eup %3718 }
0x182d   :  { %v1987_v41 = vmul.f32 %v3719_v44, %v3715_v27  ;;  %3505 = vmatmul.mubr.msk.bf16.vlgmr.msra.gmra.mrb[60].mxu1 %vm228_vm2, %v1988_v35 }
0x182e   :  { %3515 = vmatpush3.bf16.msra.mxu1 %v2091_v40  ;;  %3516 = vmatprep.mubr.msk.bf16.mxu1 %vm3777_vm1, %v3776_v15 }
0x182f   :  { %v1989_v42 = vpack.c.bf16 %v1987_v41, %v1987_v41  ;;  %3526 = vmatprep.subr.bf16.mxu1 %v3776_v15 }
0x1831   :  { %3511 = vmatmul.mubr.msk.bf16.vlgmr.msra.gmra.mrb[60].mxu0 %vm228_vm2, %v1989_v42 }
0x1832   :  { %3521 = vmatpush3.bf16.msra.mxu0 %v2138_v43  ;;  %3522 = vmatprep.mubr.msk.bf16.mxu0 %vm3777_vm1, %v3776_v15 }
0x1833   :  { %3532 = vmatprep.subr.bf16.mxu0 %v3776_v15 }
0x1839   :  { %3523 = vmatmul.mubr.msk.bf16.vlgmr.msra.gmra.mrb[64].mxu0 %vm228_vm2, %v1861_v56 }
0x183a   :  { %3534 = vmatprep.mubr.msk.bf16.mxu0 %vm3777_vm1, %v3776_v15 }
0x183b   :  { %3533 = vmatpush3.bf16.xpose.msra.mxu0 %v2239_v50 }
0x183c   :  { %3544 = vmatprep.subr.bf16.mxu0 %v3776_v15 }
0x1842   :  { %3535 = vmatmul.mubr.msk.bf16.vlgmr.msra.gmra.mrb[68].mxu0 %vm228_vm2, %v2232_v52 }
0x1843   :  { %3546 = vmatprep.mubr.msk.bf16.mxu0 %vm3777_vm1, %v3776_v15 }
0x1900   :  { %v2032_v23 = vpop.f32.mrb[60].mxu1 }
0x1901   :  { %v3506_v57 = vpop.f32.mrb[61].mxu1 }
0x1902   :  { %v2035_v60 = vpop.f32.mrb[62].mxu1 }
0x1903   :  { %v3507_v51 = vpop.f32.mrb[63].mxu1 }
0x1904   :  { %v2080_v54 = vpop.f32.mrb[60].mxu0 }
0x1905   :  { %v2086_v56 = vpack.c.bf16 %v2080_v54, %v2032_v23  ;;  %v3512_v61 = vpop.f32.mrb[61].mxu0 }
0x1906   :  { %v2083_v62 = vpop.f32.mrb[62].mxu0 }
0x1907   :  { %v3513_v0 = vpop.f32.mrb[63].mxu0  ;;  %3517 = vmatmul.mubr.msk.bf16.vlgmr.msra.gmra.mrb[64].mxu1 %vm228_vm2, %v2086_v56 }
0x1908   :  { %3527 = vmatpush3.bf16.xpose.msra.mxu1 %v2189_v63  ;;  %3528 = vmatprep.mubr.msk.bf16.mxu1 %vm3777_vm1, %v3776_v15 }
0x1909   :  { %3538 = vmatprep.subr.bf16.mxu1 %v3776_v15 }
0x190c   :  { %v2174_v1 = vpop.f32.mrb[64].mxu0 }
0x190d   :  { %v3524_v2 = vpop.f32.mrb[65].mxu0 }
0x190e   :  { %v2177_v3 = vpop.f32.mrb[66].mxu0 }
0x190f   :  { %v3525_v4 = vpop.f32.mrb[67].mxu0  ;;  %3529 = vmatmul.mubr.msk.bf16.vlgmr.msra.gmra.mrb[68].mxu1 %vm228_vm2, %v2182_v53  ;;  %v76_v53 = vld [vmem:[%s4538_s5 + $0x18] sm:$0xf] }
0x1910   :  { %3540 = vmatprep.mubr.msk.bf16.mxu1 %vm3777_vm1, %v3776_v15 }
0x1915   :  { %v2275_v6 = vpop.f32.mrb[68].mxu0 }
0x1916   :  { %v2282_v7 = vmul.f32 0.35355338, %v2275_v6  ;;  %v3536_v10 = vpop.f32.mrb[69].mxu0 }
0x1917   :  { %v2278_v11 = vpop.f32.mrb[70].mxu0 }
0x1918   :  { %v3537_v12 = vpop.f32.mrb[71].mxu0  ;;  %v2284_v13 = vadd.f32 %v4254_v14, %v2282_v7 }
0x191a   :  { %v2288_v36 = vsel %vm228_vm2, %v2284_v13, -inf }
0x191b   :  { %2289 = vmax.xlane.f32.xlu1 %v2288_v36 }
0x192c   :  { %2357 = vrot.lane.b32.xlu1 %v4226_v59, %s3785_s17 }
0x1930   :  { %2457 = vrot.lane.b32.xlu1 %v4224_v55, %s3786_s19 }
0x1934   :  { %2507 = vrot.lane.b32.xlu1 %v4226_v59, %s3786_s19 }
0x1938   :  { %2505 = vrot.lane.b32.xlu1 %v4226_v59, %s4557_s26 }
0x19a8   :  { %v2290_v37 = vpop.xlane.xlu1 %2289 }
0x19a9   :  { %v2292_v18 = vsub.f32 %v2284_v13, %v2290_v37 }
0x19ab   :  { %v2295_v19 = vmul.f32 1.442695, %v2292_v18 }
0x19ac   :  { %v2358_v16 = vpop.permute.xlu1 %2357 }
0x19ad   :  { %v2363_v17 = vsel %vm369_vm3, %v2358_v16, 0  ;;  %3720 = vpow2.f32 %v2295_v19 }
0x19ae   :  { %3545 = vmatpush3.bf16.msra.mxu0 %v2363_v17 }
0x19af   :  { %3556 = vmatprep.subr.bf16.mxu0 %v3776_v15 }
0x19b0   :  { %v2458_v50 = vpop.permute.xlu1 %2457 }
0x19b1   :  { %v2463_v23 = vsel %vm228_vm2, %v2458_v50, 0 }
0x19b4   :  { %v2508_v36 = vpop.permute.xlu1 %2507 }
0x19b5   :  { %v2513_v19 = vsel %vm228_vm2, %v2508_v36, 0 }
0x19b7   :  { %v3721_v33 = vpop.eup %3720 }
0x19b8   :  { %v2300_v35 = vsel %vm228_vm2, %v3721_v33, 0.0 }
0x19da   :  { %v2127_v20 = vpop.f32.mrb[64].mxu1 }
0x19db   :  { %v4367_v21 = vadd.f32 %v2174_v1, %v2127_v20  ;;  %v3518_v22 = vpop.f32.mrb[65].mxu1 }
0x19dc   :  { %v2130_v5 = vpop.f32.mrb[66].mxu1 }
0x19dd   :  { %v4369_v26 = vadd.f32 %v2177_v3, %v2130_v5  ;;  %v3519_v27 = vpop.f32.mrb[67].mxu1  ;;  %v2410_v3 = vsel %vm369_vm3, %v76_v53, 0 }
0x19e2   :  { %v2225_v8 = vpop.f32.mrb[68].mxu1 }
0x19e3   :  { %v2281_v28 = vmul.f32 0.35355338, %v2225_v8  ;;  %v3530_v29 = vpop.f32.mrb[69].mxu1 }
0x19e4   :  { %v2228_v58 = vpop.f32.mrb[70].mxu1 }
0x19e5   :  { %v3531_v31 = vpop.f32.mrb[71].mxu1  ;;  %v2283_v47 = vadd.f32 %v4247_v9, %v2281_v28 }
0x19e7   :  { %v2285_v32 = vsel %vm228_vm2, %v2283_v47, -inf }
0x19e8   :  { %2286 = vmax.xlane.f32.xlu0 %v2285_v32 }
0x19ec   :  { %2301 = vadd.xlane.f32.xlu0 %v2300_v35 }
0x1a75   :  { %v2287_v40 = vpop.xlane.xlu0 %2286 }
0x1a76   :  { %v2291_v44 = vsub.f32 %v2283_v47, %v2287_v40 }
0x1a78   :  { %v2293_v38 = vmul.f32 1.442695, %v2291_v44 }
0x1a79   :  { %v2302_v41 = vpop.xlane.xlu0 %2301 }
0x1a7a   :  { %3722 = vpow2.f32 %v2293_v38 }
0x1a7b   :  { %3724 = vrcp.f32 %v2302_v41 }
0x1a84   :  { %v3723_v42 = vpop.eup %3722 }
0x1a85   :  { %v3725_v43 = vpop.eup %3724  ;;  %v2297_v45 = vsel %vm228_vm2, %v3723_v42, 0.0 }
0x1a86   :  { %v2306_v49 = vmul.f32 %v3725_v43, %v3721_v33  ;;  %2298 = vadd.xlane.f32.xlu0 %v2297_v45 }
0x1a88   :  { %v2308_v52 = vpack.c.bf16 %v2306_v49, %v2306_v49 }
0x1a8a   :  { %3547 = vmatmul.mubr.msk.bf16.vlgmr.msra.gmra.mrb[72].mxu0 %vm228_vm2, %v2308_v52 }
0x1a8b   :  { %3557 = vmatpush3.bf16.xpose.msra.mxu0 %v2463_v23  ;;  %3558 = vmatprep.mubr.msk.bf16.mxu0 %vm3777_vm1, %v3776_v15 }
0x1a8c   :  { %3568 = vmatprep.subr.bf16.mxu0 %v3776_v15 }
0x1a9c   :  { %2309 = vrot.lane.b32.xlu0 %v4224_v55, %s3785_s17  ;;  %s4558_s17 = smov 40  }
0x1aa0   :  { %2455 = vrot.lane.b32.xlu0 %v4224_v55, %s4557_s26 }
0x1b13   :  { %v2299_v57 = vpop.xlane.xlu0 %2298 }
0x1b14   :  { %3726 = vrcp.f32 %v2299_v57 }
0x1b17   :  { %v2310_v60 = vpop.permute.xlu0 %2309 }
0x1b18   :  { %v2315_v51 = vsel %vm369_vm3, %v2310_v60, 0 }
0x1b19   :  { %3539 = vmatpush3.bf16.msra.mxu1 %v2315_v51 }
0x1b1a   :  { %3550 = vmatprep.subr.bf16.mxu1 %v3776_v15 }
0x1b1b   :  { %v2456_v54 = vpop.permute.xlu0 %2455 }
0x1b1c   :  { %3559 = vmatmul.mubr.msk.bf16.vlgmr.msra.gmra.mrb[76].mxu0 %vm228_vm2, %v2456_v54 }
0x1b1d   :  { %3570 = vmatprep.mubr.msk.bf16.mxu0 %vm3777_vm1, %v3776_v15 }
0x1b1e   :  { %v3727_v56 = vpop.eup %3726 }
0x1b1f   :  { %v2305_v61 = vmul.f32 %v3727_v56, %v3723_v42 }
0x1b21   :  { %v2307_v62 = vpack.c.bf16 %v2305_v61, %v2305_v61 }
0x1b23   :  { %3541 = vmatmul.mubr.msk.bf16.vlgmr.msra.gmra.mrb[72].mxu1 %vm228_vm2, %v2307_v62 }
0x1b24   :  { %3552 = vmatprep.mubr.msk.bf16.mxu1 %vm3777_vm1, %v3776_v15  ;;  %3551 = vmatpush3.bf16.msra.mxu1 %v2410_v3 }
0x1b25   :  { %3562 = vmatprep.subr.bf16.mxu1 %v3776_v15 }
0x1b5d   :  { %v2399_v63 = vpop.f32.mrb[72].mxu0 }
0x1b5e   :  { %v3548_v0 = vpop.f32.mrb[73].mxu0 }
0x1b5f   :  { %v2402_v1 = vpop.f32.mrb[74].mxu0 }
0x1b60   :  { %v3549_v2 = vpop.f32.mrb[75].mxu0 }
0x1bef   :  { %v2499_v4 = vpop.f32.mrb[76].mxu0 }
0x1bf0   :  { %v2555_v6 = vmul.f32 0.35355338, %v2499_v4  ;;  %v3560_v7 = vpop.f32.mrb[77].mxu0 }
0x1bf1   :  { %v2502_v10 = vpop.f32.mrb[78].mxu0 }
0x1bf2   :  { %v3561_v11 = vpop.f32.mrb[79].mxu0  ;;  %v2557_v12 = vadd.f32 %v4247_v9, %v2555_v6  ;;  %v2506_v9 = vpop.permute.xlu1 %2505 }
0x1bf4   :  { %v2559_v13 = vsel %vm228_vm2, %v2557_v12, -inf }
0x1bf5   :  { %2560 = vmax.xlane.f32.xlu0 %v2559_v13 }
0x1bf6   :  { %v2351_v37 = vpop.f32.mrb[72].mxu1 }
0x1bf7   :  { %v2405_v16 = vpack.c.bf16 %v2399_v63, %v2351_v37  ;;  %v3542_v17 = vpop.f32.mrb[73].mxu1  ;;  %v77_v63 = vld [vmem:[%s4538_s5 + $0x1c] sm:$0xf] }
0x1bf8   :  { %v2354_v18 = vpop.f32.mrb[74].mxu1  ;;  %v2684_v0 = vsel %vm369_vm3, %v77_v63, 0 }
0x1bf9   :  { %v3543_v20 = vpop.f32.mrb[75].mxu1  ;;  %3553 = vmatmul.mubr.msk.bf16.vlgmr.msra.gmra.mrb[76].mxu1 %vm228_vm2, %v2405_v16 }
0x1bfa   :  { %3563 = vmatpush3.bf16.xpose.msra.mxu1 %v2513_v19  ;;  %3564 = vmatprep.mubr.msk.bf16.mxu1 %vm3777_vm1, %v3776_v15 }
0x1bfb   :  { %3574 = vmatprep.subr.bf16.mxu1 %v3776_v15 }
0x1c01   :  { %3565 = vmatmul.mubr.msk.bf16.vlgmr.msra.gmra.mrb[80].mxu1 %vm228_vm2, %v2506_v9 }
0x1c02   :  { %3576 = vmatprep.mubr.msk.bf16.mxu1 %vm3777_vm1, %v3776_v15 }
0x1c82   :  { %v2561_v22 = vpop.xlane.xlu0 %2560 }
0x1c83   :  { %v2565_v5 = vsub.f32 %v2557_v12, %v2561_v22  ;;  %v3183_v12 = vld [vmem:[%s4539_s6 + $0x1] ss:$0 sm:$0xff] }
0x1c85   :  { %v2567_v27 = vmul.f32 1.442695, %v2565_v5 }
0x1c87   :  { %3728 = vpow2.f32 %v2567_v27 }
0x1c91   :  { %v3729_v8 = vpop.eup %3728 }
0x1c92   :  { %v2571_v28 = vsel %vm228_vm2, %v3729_v8, 0.0 }
0x1c93   :  { %2572 = vadd.xlane.f32.xlu0 %v2571_v28 }
0x1ccc   :  { %v2446_v29 = vpop.f32.mrb[76].mxu1 }
0x1ccd   :  { %v2453_v58 = vadd.f32 %v2446_v29, %v4367_v21  ;;  %v3554_v31 = vpop.f32.mrb[77].mxu1 }
0x1cce   :  { %v2449_v47 = vpop.f32.mrb[78].mxu1 }
0x1ccf   :  { %v2454_v32 = vadd.f32 %v2449_v47, %v4369_v26  ;;  %v3555_v33 = vpop.f32.mrb[79].mxu1 }
0x1cd4   :  { %v2549_v35 = vpop.f32.mrb[80].mxu1 }
0x1cd5   :  { %v2556_v40 = vmul.f32 0.35355338, %v2549_v35  ;;  %v3566_v44 = vpop.f32.mrb[81].mxu1 }
0x1cd6   :  { %v2552_v38 = vpop.f32.mrb[82].mxu1 }
0x1cd7   :  { %v3567_v41 = vpop.f32.mrb[83].mxu1  ;;  %v2558_v42 = vadd.f32 %v4254_v14, %v2556_v40  ;;  %v3647_v40 = vld [vmem:[%s4541_s8 + $0x18] sm:$0xff]  }
0x1cd9   :  { %v2562_v43 = vsel %vm228_vm2, %v2558_v42, -inf }
0x1cda   :  { %2563 = vmax.xlane.f32.xlu1 %v2562_v43 }
0x1ceb   :  { %2631 = vrot.lane.b32.xlu1 %v4226_v59, %s4558_s17 }
0x1d20   :  { %v2573_v14 = vpop.xlane.xlu0 %2572 }
0x1d67   :  { %v2564_v45 = vpop.xlane.xlu1 %2563 }
0x1d68   :  { %v2566_v21 = vsub.f32 %v2558_v42, %v2564_v45 }
0x1d6a   :  { %v2569_v49 = vmul.f32 1.442695, %v2566_v21  ;;  %v4455_v21 = vld [vmem:[%s4540_s7 + $0x4] sm:$0xf] }
0x1d6b   :  { %v2632_v50 = vpop.permute.xlu1 %2631 }
0x1d6c   :  { %3730 = vpow2.f32 %v2569_v49  ;;  %v2637_v26 = vsel %vm369_vm3, %v2632_v50, 0  ;;  %v2768_v49 = vrot.slane %v4455_v21, %v3902_v25  ;;  %v3648_v25 = vld [vmem:[%s4543_s10 + $0x20] sm:$0xff]  }
0x1d6d   :  { %3575 = vmatpush3.bf16.msra.mxu1 %v2637_v26  ;;  %3732 = vrcp.f32 %v2573_v14 }
0x1d6e   :  { %3586 = vmatprep.subr.bf16.mxu1 %v3776_v15 }
0x1d76   :  { %v3731_v52 = vpop.eup %3730 }
0x1d77   :  { %v2574_v23 = vsel %vm228_vm2, %v3731_v52, 0.0  ;;  %v3733_v59 = vpop.eup %3732 }
0x1d78   :  { %2575 = vadd.xlane.f32.xlu0 %v2574_v23  ;;  %v2579_v60 = vmul.f32 %v3733_v59, %v3729_v8  ;;  %v2774_v59 = vrot.slane %v4455_v21, %v3909_v30  ;;  %v3649_v30 = vld [vmem:[%s4543_s10 + $0x28] sm:$0xff]  }
0x1d7a   :  { %v2581_v56 = vpack.c.bf16 %v2579_v60, %v2579_v60 }
0x1d8e   :  { %2583 = vrot.lane.b32.xlu0 %v4224_v55, %s4558_s17 }
0x1e05   :  { %v2576_v57 = vpop.xlane.xlu0 %2575 }
0x1e06   :  { %3734 = vrcp.f32 %v2576_v57 }
0x1e09   :  { %v2584_v51 = vpop.permute.xlu0 %2583 }
0x1e0a   :  { %v2589_v54 = vsel %vm369_vm3, %v2584_v51, 0 }
0x1e0b   :  { %3569 = vmatpush3.bf16.msra.mxu0 %v2589_v54 }
0x1e0c   :  { %3580 = vmatprep.subr.bf16.mxu0 %v3776_v15 }
0x1e0e   :  { %3571 = vmatmul.mubr.msk.bf16.vlgmr.msra.gmra.mrb[80].mxu0 %vm228_vm2, %v2581_v56  ;;  %v3650_v56 = vld [vmem:[%s4543_s10 + $0x30] sm:$0xff]  }
0x1e0f   :  { %3582 = vmatprep.mubr.msk.bf16.mxu0 %vm3777_vm1, %v3776_v15  ;;  %3581 = vmatpush3.bf16.msra.mxu0 %v2684_v0 }
0x1e10   :  { %v3735_v61 = vpop.eup %3734  ;;  %3594 = vmatprep.subr.bf16.mxu0 %v3776_v15 }
0x1e11   :  { %v2580_v55 = vmul.f32 %v3735_v61, %v3731_v52  ;;  %v3651_v61 = vld [vmem:[%s4543_s10 + $0x38] sm:$0xff]  }
0x1e13   :  { %v2582_v62 = vpack.c.bf16 %v2580_v55, %v2580_v55  ;;  %v3184_v55 = vld [vmem:[%s4542_s9 + $0x1] ss:$0 sm:$0xff] }
0x1e15   :  { %3577 = vmatmul.mubr.msk.bf16.vlgmr.msra.gmra.mrb[84].mxu1 %vm228_vm2, %v2582_v62 }
0x1e16   :  { %3590 = vmatprep.mubr.msk.bf16.mxu1 %vm3777_vm1, %v3776_v15 }
0x1ee1   :  { %v2625_v1 = vpop.f32.mrb[80].mxu0 }
0x1ee2   :  { %v3572_v2 = vpop.f32.mrb[81].mxu0 }
0x1ee3   :  { %v2628_v53 = vpop.f32.mrb[82].mxu0 }
0x1ee4   :  { %v3573_v3 = vpop.f32.mrb[83].mxu0 }
0x1ee8   :  { %v2673_v4 = vpop.f32.mrb[84].mxu1 }
0x1ee9   :  { %v2679_v6 = vpack.c.bf16 %v2673_v4, %v2625_v1  ;;  %v3578_v7 = vpop.f32.mrb[85].mxu1 }
0x1eea   :  { %v2676_v10 = vpop.f32.mrb[86].mxu1 }
0x1eeb   :  { %v3579_v11 = vpop.f32.mrb[87].mxu1  ;;  %3583 = vmatmul.mubr.msk.bf16.vlgmr.msra.gmra.mrb[84].mxu0 %vm228_vm2, %v2679_v6 }
0x1eec   :  { %3602 = vmatprep.mubr.msk.bf16.mxu0 %vm3777_vm1, %v3776_v15  ;;  %3595 = vmatpush3.bf16.msra.mxu0 %v3648_v25  ;;  %v2964_v25 = vrot.slane %v4455_v21, %v1564_v34 }
0x1eed   :  { %3596 = vmatprep.subr.bf16.mxu0 %v3776_v15 }
0x1ef0   :  { %3597 = vmatpush3.bf16.msra.mxu0 %v3649_v30 }
0x1ef1   :  { %3598 = vmatprep.subr.bf16.mxu0 %v3776_v15 }
0x1ef4   :  { %3599 = vmatpush3.bf16.msra.mxu0 %v3650_v56  ;;  %v2970_v56 = vrot.slane %v4455_v21, %v1570_v39  ;;  %v3655_v39 = vld [vmem:[%s4547_s14 + $0x8] sm:$0xff]   ;;  %v3194_v21 = vld [vmem:[%s4546_s13] ss:$0 sm:$0xff]  ;;  %s3789_s14 = smov [#allocation2]  }
0x1ef5   :  { %3600 = vmatprep.subr.bf16.mxu0 %v3776_v15  ;;  %s3114_s3 = sshll.u32 %s3789_s14, 4  ;;  %s3115_s3 = int_to_ptr.vmem [resolvable:$true] %s3114_s3 }
0x1ef6   :  { %s3752_s13 = scalar_lea.vmem %s3115_s3, 32  ;;  %p3757_p1 = scmp.lt.s32.totalorder %s3115_s3, %s3115_s3 }
0x1ef7   :  { %p3753_p0 = scmp.ne.s32.totalorder %s3115_s3, %s3752_s13  ;;  %p3758_p2 = scmp.lt.s32.totalorder %s3752_s13, %s3752_s13 }
0x1ef8   :  { %3601 = vmatpush3.bf16.msra.mxu0 %v3651_v61 }
0x1ef9   :  { %p3759_p3 = por %p3758_p2, %p3757_p1 }
0x1efb   :  { %p3760_p4 = pnand %p3759_p3, %p3753_p0 }
0x1fbe   :  { %v2720_v13 = vpop.f32.mrb[84].mxu0 }
0x1fbf   :  { %v2727_v36 = vadd.f32 %v2720_v13, %v2453_v58  ;;  %v3584_v37 = vpop.f32.mrb[85].mxu0 }
0x1fc0   :  { %v2723_v16 = vpop.f32.mrb[86].mxu0 }
0x1fc1   :  { %v2735_v17 = vadd.f32 %v3183_v12, %v2727_v36  ;;  %v2728_v18 = vadd.f32 %v2723_v16, %v2454_v32  ;;  %v3585_v19 = vpop.f32.mrb[87].mxu0 }
0x1fc3   :  { %v2736_v20 = vadd.f32 %v3183_v12, %v2728_v18  ;;  %v2737_v9 = vadd.f32 %v2735_v17, %v4212_v46 }
0x1fc5   :  { %v2739_v22 = vsel %vm120_vm0, %v2737_v9, 0.0  ;;  %v2738_v5 = vadd.f32 %v2736_v20, %v4214_v48  ;;  %v3646_v48 = vld [vmem:[%s4541_s8 + $0x10] sm:$0xff]  }
0x1fc6   :  { %2740 = vadd.xlane.f32.xlu1 %v2739_v22  ;;  %3587 = vmatpush3.bf16.msra.mxu1 %v3646_v48 }
0x1fc7   :  { %v2742_v27 = vsel %vm120_vm0, %v2738_v5, 0.0  ;;  %3588 = vmatprep.subr.bf16.mxu1 %v3776_v15 }
0x1fc8   :  { %2743 = vadd.xlane.f32.xlu0 %v2742_v27 }
0x1fca   :  { %3589 = vmatpush3.bf16.msra.mxu1 %v3647_v40 }
0x1fcb   :  { %3606 = vmatprep.subr.bf16.mxu1 %v3776_v15 }
0x2053   :  { %v2741_v8 = vpop.xlane.xlu1 %2740 }
0x2054   :  { %v2745_v28 = vmul.f32 0.03125, %v2741_v8  ;;  %v3188_v8 = vld [vmem:[%s4544_s11 + $0x1] ss:$0 sm:$0xff] }
0x2055   :  { %v2744_v29 = vpop.xlane.xlu0 %2743 }
0x2056   :  { %v2747_v58 = vsub.f32 %v2737_v9, %v2745_v28  ;;  %v2746_v31 = vmul.f32 0.03125, %v2744_v29 }
0x2058   :  { %v2748_v47 = vsub.f32 %v2738_v5, %v2746_v31  ;;  %v2749_v33 = vmul.f32 %v2747_v58, %v2747_v58 }
0x205a   :  { %v2751_v32 = vsel %vm120_vm0, %v2749_v33, 0.0  ;;  %v2750_v35 = vmul.f32 %v2748_v47, %v2748_v47 }
0x205b   :  { %2752 = vadd.xlane.f32.xlu0 %v2751_v32 }
0x205c   :  { %v2754_v46 = vsel %vm120_vm0, %v2750_v35, 0.0 }
0x205d   :  { %2755 = vadd.xlane.f32.xlu1 %v2754_v46 }
0x20e8   :  { %v2753_v44 = vpop.xlane.xlu0 %2752 }
0x20e9   :  { %v2757_v38 = vmul.f32 0.03125, %v2753_v44 }
0x20ea   :  { %v2756_v41 = vpop.xlane.xlu1 %2755 }
0x20eb   :  { %v2759_v42 = vadd.f32 1e-05, %v2757_v38  ;;  %v2758_v43 = vmul.f32 0.03125, %v2756_v41 }
0x20ed   :  { %3736 = vrsqrt.f32 %v2759_v42  ;;  %v2760_v45 = vadd.f32 1e-05, %v2758_v43 }
0x20ef   :  { %3738 = vrsqrt.f32 %v2760_v45 }
0x20f7   :  { %v3737_v50 = vpop.eup %3736 }
0x20f8   :  { %v2763_v26 = vmul.f32 %v3737_v50, %v2747_v58 }
0x20f9   :  { %v3739_v52 = vpop.eup %3738 }
0x20fa   :  { %v2769_v23 = vmul.f32 %v2768_v49, %v2763_v26  ;;  %v2764_v14 = vmul.f32 %v3739_v52, %v2748_v47  ;;  %v3652_v52 = vld [vmem:[%s4545_s12] sm:$0xff]  }
0x20fc   :  { %v2770_v57 = vmul.f32 %v2768_v49, %v2764_v14  ;;  %v2775_v60 = vadd.f32 %v2774_v59, %v2769_v23  ;;  %v3653_v23 = vld [vmem:[%s4545_s12 + $0x8] sm:$0xff]  }
0x20fe   :  { %v2776_v51 = vadd.f32 %v2774_v59, %v2770_v57 }
0x2100   :  { %v2777_v54 = vpack.c.bf16 %v2776_v51, %v2775_v60 }
0x2102   :  { %3591 = vmatmul.mubr.msk.bf16.vlgmr.msra.gmra.mrb[88].mxu1 %vm120_vm0, %v2777_v54 }
0x2103   :  { %3610 = vmatprep.mubr.msk.bf16.mxu1 %vm3777_vm1, %v3776_v15  ;;  %3607 = vmatpush3.bf16.msra.mxu1 %v3652_v52 }
0x2104   :  { %3608 = vmatprep.subr.bf16.mxu1 %v3776_v15 }
0x2107   :  { %3609 = vmatpush3.bf16.msra.mxu1 %v3653_v23 }
0x2108   :  { %3614 = vmatprep.subr.bf16.mxu1 %v3776_v15 }
0x21d5   :  { %v2833_v62 = vpop.f32.mrb[88].mxu1 }
0x21d6   :  { %v2834_v63 = vadd.f32 %v3184_v55, %v2833_v62  ;;  %v3592_v0 = vpop.f32.mrb[89].mxu1 }
0x21d7   :  { %v2836_v1 = vpop.f32.mrb[90].mxu1 }
0x21d8   :  { %v2840_v2 = vmul.f32 %v2834_v63, %v2834_v63  ;;  %v2837_v53 = vadd.f32 %v3184_v55, %v2836_v1  ;;  %v3593_v3 = vpop.f32.mrb[91].mxu1 }
0x21da   :  { %v2842_v4 = vmul.f32 %v2840_v2, %v2834_v63  ;;  %v2841_v6 = vmul.f32 %v2837_v53, %v2837_v53 }
0x21dc   :  { %v2844_v7 = vmul.f32 0.044715, %v2842_v4  ;;  %v2843_v10 = vmul.f32 %v2841_v6, %v2837_v53 }
0x21de   :  { %v2846_v11 = vadd.f32 %v2844_v7, %v2834_v63  ;;  %v2845_v12 = vmul.f32 0.044715, %v2843_v10 }
0x21e0   :  { %v2848_v13 = vmul.f32 0.7978846, %v2846_v11  ;;  %v2847_v36 = vadd.f32 %v2845_v12, %v2837_v53 }
0x21e2   :  { %3740 = vtanh.f32 %v2848_v13  ;;  %v2849_v37 = vmul.f32 0.7978846, %v2847_v36 }
0x21e4   :  { %3742 = vtanh.f32 %v2849_v37 }
0x21ec   :  { %v3741_v16 = vpop.eup %3740 }
0x21ed   :  { %v2852_v17 = vadd.f32 1.0, %v3741_v16 }
0x21ee   :  { %v3743_v18 = vpop.eup %3742 }
0x21ef   :  { %v2854_v19 = vmul.f32 0.5, %v2852_v17  ;;  %v2853_v20 = vadd.f32 1.0, %v3743_v18 }
0x21f1   :  { %v2855_v9 = vmul.f32 0.5, %v2853_v20  ;;  %v2856_v22 = vmul.f32 %v2854_v19, %v2834_v63 }
0x21f3   :  { %v2857_v5 = vmul.f32 %v2855_v9, %v2837_v53 }
0x21f5   :  { %v2858_v27 = vpack.c.bf16 %v2857_v5, %v2856_v22 }
0x21f7   :  { %3603 = vmatmul.mubr.msk.bf16.vlgmr.msra.gmra.mrb[88].mxu0 %vm1489_vm4, %v2858_v27 }
0x22ca   :  { %v2926_v28 = vpop.f32.mrb[88].mxu0 }
0x22cb   :  { %v2927_v29 = vadd.f32 %v3188_v8, %v2926_v28  ;;  %v3604_v58 = vpop.f32.mrb[89].mxu0 }
0x22cc   :  { %v2929_v31 = vpop.f32.mrb[90].mxu0 }
0x22cd   :  { %v2930_v47 = vadd.f32 %v3188_v8, %v2929_v31  ;;  %v3605_v33 = vpop.f32.mrb[91].mxu0  ;;  %v2933_v32 = vadd.f32 %v2927_v29, %v2775_v60 }
0x22cf   :  { %v2935_v35 = vsel %vm120_vm0, %v2933_v32, 0.0  ;;  %v2934_v46 = vadd.f32 %v2930_v47, %v2776_v51 }
0x22d0   :  { %2936 = vadd.xlane.f32.xlu1 %v2935_v35 }
0x22d1   :  { %v2938_v48 = vsel %vm120_vm0, %v2934_v46, 0.0 }
0x22d2   :  { %2939 = vadd.xlane.f32.xlu0 %v2938_v48 }
0x235d   :  { %v2937_v40 = vpop.xlane.xlu1 %2936 }
0x235e   :  { %v2941_v44 = vmul.f32 0.03125, %v2937_v40 }
0x235f   :  { %v2940_v38 = vpop.xlane.xlu0 %2939 }
0x2360   :  { %v2943_v41 = vsub.f32 %v2933_v32, %v2941_v44  ;;  %v2942_v42 = vmul.f32 0.03125, %v2940_v38 }
0x2362   :  { %v2944_v43 = vsub.f32 %v2934_v46, %v2942_v42  ;;  %v2945_v45 = vmul.f32 %v2943_v41, %v2943_v41 }
0x2364   :  { %v2947_v49 = vsel %vm120_vm0, %v2945_v45, 0.0  ;;  %v2946_v50 = vmul.f32 %v2944_v43, %v2944_v43 }
0x2365   :  { %2948 = vadd.xlane.f32.xlu1 %v2947_v49 }
0x2366   :  { %v2950_v26 = vsel %vm120_vm0, %v2946_v50, 0.0 }
0x2367   :  { %2951 = vadd.xlane.f32.xlu0 %v2950_v26 }
0x23f2   :  { %v2949_v14 = vpop.xlane.xlu1 %2948 }
0x23f3   :  { %v2953_v59 = vmul.f32 0.03125, %v2949_v14 }
0x23f4   :  { %v2952_v57 = vpop.xlane.xlu0 %2951 }
0x23f5   :  { %v2955_v60 = vadd.f32 1e-05, %v2953_v59  ;;  %v2954_v51 = vmul.f32 0.03125, %v2952_v57 }
0x23f7   :  { %3744 = vrsqrt.f32 %v2955_v60  ;;  %v2956_v54 = vadd.f32 1e-05, %v2954_v51 }
0x23f9   :  { %3746 = vrsqrt.f32 %v2956_v54 }
0x2401   :  { %v3745_v30 = vpop.eup %3744 }
0x2402   :  { %v2959_v61 = vmul.f32 %v3745_v30, %v2943_v41 }
0x2403   :  { %v3747_v55 = vpop.eup %3746 }
0x2404   :  { %v2965_v62 = vmul.f32 %v2964_v25, %v2959_v61  ;;  %v2960_v63 = vmul.f32 %v3747_v55, %v2944_v43 }
0x2406   :  { %v2971_v0 = vadd.f32 %v2970_v56, %v2965_v62  ;;  %v2966_v1 = vmul.f32 %v2964_v25, %v2960_v63 }
0x2408   :  { %v2972_v2 = vadd.f32 %v2970_v56, %v2966_v1  ;;  %v2973_v53 = vpack.c.bf16 %v2971_v0, %v2971_v0 }
0x240a   :  { %v2974_v3 = vpack.c.bf16 %v2972_v2, %v2972_v2  ;;  %v2983_v6 = vunpack.c.l.b16 %v2973_v53 }
0x240c   :  { %v2984_v4 = vunpack.c.l.b16 %v2974_v3 }
0x240e   :  { %v2985_v7 = vrot.slane %v2984_v4, 7 }
0x2410   :  { %v2987_v10 = vsel %vm2986_vm5, %v2985_v7, %v2983_v6 }
0x2411   :  { %v2988_v34 = vpack.c.b16 %v2987_v10, %v2987_v10 }
0x2413   :  { %3611 = vmatmul.mubr.msk.bf16.vlgmr.msra.gmra.mrb[92].mxu1 %vm120_vm0, %v2988_v34 }
0x2414   :  { %3618 = vmatprep.mubr.msk.bf16.mxu1 %vm3777_vm1, %v3776_v15  ;;  %3615 = vmatpush3.bf16.msra.mxu1 %v3654_v24 }
0x2415   :  { %3616 = vmatprep.subr.bf16.mxu1 %v3776_v15  ;;  %v3198_v15 = vld [vmem:[%s4548_s15] ss:$0 sm:$0xff] }
0x2418   :  { %3617 = vmatpush3.bf16.msra.mxu1 %v3655_v39 }
0x24e6   :  { %v3038_v11 = vpop.f32.mrb[92].mxu1 }
0x24e7   :  { %v3039_v12 = vadd.f32 %v3194_v21, %v3038_v11  ;;  %v3612_v13 = vpop.f32.mrb[93].mxu1 }
0x24e8   :  { %v3041_v36 = vpop.f32.mrb[94].mxu1 }
0x24e9   :  { %3748 = vtanh.f32 %v3039_v12  ;;  %v3613_v37 = vpop.f32.mrb[95].mxu1 }
0x24f3   :  { %v3749_v16 = vpop.eup %3748 }
0x24f4   :  { %v3045_v17 = vpack.c.bf16 %v3749_v16, %v3749_v16 }
0x24f6   :  { %3619 = vmatmul.mubr.msk.bf16.vlgmr.msra.gmra.mrb[96].mxu1 %vm120_vm0, %v3045_v17 }
0x25c9   :  { %v3101_v18 = vpop.f32.mrb[96].mxu1 }
0x25ca   :  { %v3102_v19 = vadd.f32 %v3198_v15, %v3101_v18  ;;  %v3620_v20 = vpop.f32.mrb[97].mxu1 }
0x25cb   :  { %v3104_v9 = vpop.f32.mrb[98].mxu1 }
0x25cc   :  { %3107 = vst [vmem:[#allocation2] sm:$0x3] %v3102_v19  ;;  %v3621_v22 = vpop.f32.mrb[99].mxu1 }
0x25cd   :  { %3763 = shalt.err (!%p3760_p4)
}
0x25ce   :  { %s3764_s15 = scalar_lea.hbm %s4549_s16, 32 }
0x25cf   :  { %p3765_p5 = scmp.ne.s32.totalorder %s4549_s16, %s3764_s15  ;;  %p3768_p6 = scmp.lt.u32.totalorder %s3764_s15, %s4549_s16 }
0x25d1   :  { %p3770_p7 = pnand %p3768_p6, %p3765_p5 }
0x25d3   :  { %3773 = shalt.err (!%p3770_p7)
}
0x25d4   :  { %3117 = dma.vmem_to_hbm [thread:$0]  %s3115_s3, 32, %s4549_s16, [#allocation3]  }
0x25d5   :  { %3774 = dma.done.wait [#allocation3], 32  }
0x25d6   :  { %3775 = vsyncadd [#allocation3], 4294967264 }
0x25d7   :  { %3121 = vsyncpa [#allocation3], 1 }

</bundles_post_ra>
